<compile_context>
chip_gen: v7x
topology: tpu7x:2x2x1
jax: 0.10.0
libtpu: 0.0.40
codegen_flags: <defaults>
</compile_context>

<pallas_src>
import numpy as np
import jax
import jax.numpy as jnp
from jax import lax
from jax.experimental import pallas as pl
from jax.experimental.pallas import tpu as pltpu


# ----------------------------------------------------------------------------
# Deterministic "parameter" construction (glue, plain numpy)
# ----------------------------------------------------------------------------
def _box_matrix(size: int, radius: int) -> np.ndarray:
    """Banded ones matrix so that (B @ x) sums x over a clipped window of +-r."""
    idx = np.arange(size)
    return (np.abs(idx[:, None] - idx[None, :]) <= radius).astype(np.float32)


def _normalized_box_matrix(size: int, radius: int) -> np.ndarray:
    """Box matrix with each row divided by its clipped window count.

    N[i, j] = count_h[i] * count_w[j] is exactly separable, so pre-dividing the
    H rows and W rows by their counts makes Bh_n @ X @ Bw_n^T the box *mean*
    directly (numerically exact refactor of box(X)/N).
    """
    band = _box_matrix(size, radius).astype(np.float64)
    counts = band.sum(axis=1)
    return (band / counts[:, None]).astype(np.float32)


def _bicubic_matrix(out_size: int, in_size: int) -> np.ndarray:
    """PyTorch bicubic (a=-0.75), align_corners=True, as a dense (out,in) matrix."""
    A = -0.75

    def c1(x):  # |x| <= 1
        return ((A + 2.0) * x - (A + 3.0)) * x * x + 1.0

    def c2(x):  # 1 < |x| < 2
        return ((A * x - 5.0 * A) * x + 8.0 * A) * x - 4.0 * A

    W = np.zeros((out_size, in_size), dtype=np.float64)
    scale = 0.0 if out_size == 1 else (in_size - 1) / (out_size - 1)
    for o in range(out_size):
        real = scale * o
        i0 = int(np.floor(real))
        t = real - i0
        coeffs = [c2(t + 1.0), c1(t), c1(1.0 - t), c2(2.0 - t)]
        for k in range(4):
            src = min(max(i0 - 1 + k, 0), in_size - 1)  # index clamping (PyTorch)
            W[o, src] += coeffs[k]
    return W.astype(np.float32)


# ----------------------------------------------------------------------------
# Chip-aware VMEM sizing and tiling heuristics
# ----------------------------------------------------------------------------
def _vmem_budget():
    """(vmem_limit_bytes, block budget).  v5e/v6e: 128 MiB VMEM; v7x: 64 MiB."""
    try:
        cap = int(pltpu.get_tpu_info().vmem_capacity_bytes)
    except Exception:  # interpreter / unknown chip
        cap = 64 * 2 ** 20
    limit = max(32 * 2 ** 20, min(cap - 24 * 2 ** 20, 64 * 2 ** 20))
    return limit, int(limit * 0.7)


def _pick_tb(bc: int, c: int, h_lr: int, shared: bool, tb_max: int = 8) -> int:
    """Planes per grid step.

    Non-shared guide: TB | B*C.  Shared guide (c_x == 1): TB | C so a group
    never straddles a batch element (single guide plane per group).
    Keep TB*Hl a multiple of 8 (sublane alignment of the y_lr block) and keep
    the block-diagonal Bh constant (TB*Hl)^2 from exploding.
    """
    limit = c if shared else bc
    cand = [d for d in range(1, limit + 1) if limit % d == 0]
    valid = [d for d in cand if (d * h_lr) % 8 == 0 or d == bc]
    if not valid:
        valid = cand  # unaligned sublane blocks are slower but still correct
    small = [d for d in valid if d <= tb_max and d * h_lr <= 1024]
    if not small:
        small = [d for d in valid if d <= tb_max]
    return max(small) if small else min(valid)


def _pick_th(h_hr, w_hr, h_lr, w_lr, tb, gx, hr_bytes, out_bytes, up_bytes,
             budget_bytes):
    """Hh rows per tile so the real VMEM working set stays inside the budget."""
    min_item = min(hr_bytes, out_bytes, up_bytes)
    align = {4: 8, 2: 16, 1: 32}.get(min_item, 8)
    # VMEM that does not scale with th: A/b scratch, low-res blocks, constants
    # (double-buffered), and the low-res live intermediates of the j==0 stage.
    fixed = (2 * tb * h_lr * w_hr * up_bytes                    # abw scratch
             + 2 * (tb + gx) * h_lr * w_lr * 4                  # LR input blocks
             + 2 * ((tb * h_lr) ** 2 + w_lr * w_lr) * 4         # nbhd, nbwt
             + 2 * w_lr * w_hr * up_bytes                       # uwt
             + 16 * tb * h_lr * w_lr * 4                        # LR live values
             + 2 * tb * h_lr * w_hr * 4)                        # f32 abw interm.
    # Per Hh row of a tile: double-buffered x_hr / out / uh blocks plus ~4 live
    # f32 row-vectors in the blend.
    per_row = (2 * gx * hr_bytes + 2 * tb * out_bytes + 4 * 4) * w_hr \
        + 2 * h_lr * up_bytes
    avail = max(budget_bytes - fixed, align * per_row)
    th_max = int(avail // per_row)
    if h_hr <= th_max:
        return h_hr
    th = max(align, (th_max // align) * align)
    # Prefer a tile that divides Hh (no padded rows in the last uh block).
    for cand in range(th, max(align, th // 2) - 1, -align):
        if h_hr % cand == 0:
            return cand
    return th


# ----------------------------------------------------------------------------
# Pallas kernel
# ----------------------------------------------------------------------------
def _make_kernel(*, tb, gx, hl, wl, wh, eps, up_dtype, shared, approx_recip):
    def kernel(xlr_ref, ylr_ref, xhr_ref, nbhd_ref, nbwt_ref, uh_ref, uwt_ref,
               o_ref, abw_ref):
        j = pl.program_id(1)  # Hh-tile index

        # ---- low-res stage: once per plane group (first Hh tile) ------------
        @pl.when(j == 0)
        def _lowres():
            x = xlr_ref[...]                      # (gx*Hl, Wl) f32
            y = ylr_ref[...]                      # (TB*Hl, Wl) f32
            if shared:
                # Single guide plane shared by all TB planes of the group:
                # replicate in VMEM (rows only, no HBM duplication).
                x = jnp.concatenate([x] * tb, axis=0)

            n = tb * hl
            # Row-stacked stats of all TB planes (row concat only, no lane work)
            v = jnp.concatenate([x, y, x * y, x * x], axis=0)   # (4*TB*Hl, Wl)
            # W-direction box means for every stat/plane in ONE matmul
            # (normalization folded into the matrices).
            t = jnp.dot(v, nbwt_ref[...], preferred_element_type=jnp.float32)

            # H-direction box means: block-diagonal normalized Bh (TB copies)
            # applied per statistic -> no lane-stacking / per-plane gathers.
            nbhd = nbhd_ref[...]                  # (TB*Hl, TB*Hl)
            mean_x = jnp.dot(nbhd, t[0 * n:1 * n],
                             preferred_element_type=jnp.float32)
            mean_y = jnp.dot(nbhd, t[1 * n:2 * n],
                             preferred_element_type=jnp.float32)
            mean_xy = jnp.dot(nbhd, t[2 * n:3 * n],
                              preferred_element_type=jnp.float32)
            mean_xx = jnp.dot(nbhd, t[3 * n:4 * n],
                              preferred_element_type=jnp.float32)

            cov_xy = mean_xy - mean_x * mean_y
            var_x = mean_xx - mean_x * mean_x          # stats stay in f32
            a = cov_xy * pl.reciprocal(var_x + eps, approx=approx_recip)
            b = mean_y - a * mean_x

            # W-direction bicubic upsample of every A/b map in ONE matmul and
            # ONE dense full-ref store into the leading-dim-indexed scratch
            # (planes 0..TB-1 hold A, planes TB..2*TB-1 hold b).
            ab = jnp.concatenate([a, b], axis=0).astype(up_dtype)  # (2*TB*Hl,Wl)
            abw = jnp.dot(ab, uwt_ref[...], preferred_element_type=jnp.float32)
            abw_ref[...] = abw.reshape(2 * tb, hl, wh).astype(abw_ref.dtype)

        # ---- per-Hh-tile stage ------------------------------------------------
        uh = uh_ref[...]                           # (th, Hl), up_dtype
        if shared:
            xg_shared = xhr_ref[0].astype(jnp.float32)
        for p in range(tb):
            # Per-plane H-direction upsample keeps the live f32 intermediate at
            # (th, Wh) instead of (th, 2*TB*Wh); blend stays in f32 (v5e VPU).
            mean_a = jnp.dot(uh, abw_ref[p],
                             preferred_element_type=jnp.float32)
            mean_b = jnp.dot(uh, abw_ref[tb + p],
                             preferred_element_type=jnp.float32)
            xg = xg_shared if shared else xhr_ref[p].astype(jnp.float32)
            o_ref[p] = (mean_a * xg + mean_b).astype(o_ref.dtype)

    return kernel


# ----------------------------------------------------------------------------
# Wrapper
# ----------------------------------------------------------------------------
def fast_guided_filter(x_lr, y_lr, x_hr, *, radius: int, eps: float = 1e-8,
                       upsample_dtype=jnp.bfloat16, tb_max: int = 8):
    """Equivalent to FastGuidedFilter.forward(x_lr, y_lr, x_hr). NCHW in / out."""
    n_x, c_x, h_lr, w_lr = x_lr.shape
    n_y, c_y, h_ylr, w_ylr = y_lr.shape
    n_h, c_h, h_hr, w_hr = x_hr.shape
    assert n_x == n_y == n_h
    assert c_x == c_h and (c_x == 1 or c_x == c_y)
    assert h_lr == h_ylr and w_lr == w_ylr
    assert h_lr > 2 * radius + 1 and w_lr > 2 * radius + 1

    C = c_y
    BC = n_x * C

    # Single-channel guide: keep it un-broadcast in HBM; the BlockSpec
    # index_map maps the plane-group index to its batch plane.
    shared = (c_x == 1 and C > 1 and (h_lr % 8 == 0 or n_x == 1))
    if c_x == 1 and C > 1 and not shared:
        # Fallback for unaligned low-res guide rows: materialize the broadcast.
        x_lr = jnp.broadcast_to(x_lr, (n_x, C, h_lr, w_lr))
        x_hr = jnp.broadcast_to(x_hr, (n_x, C, h_hr, w_hr))

    up_dtype = jnp.dtype(upsample_dtype)
    out_dtype = jnp.result_type(x_lr.dtype, y_lr.dtype, x_hr.dtype)
    hr_bytes = jnp.dtype(x_hr.dtype).itemsize
    out_bytes = jnp.dtype(out_dtype).itemsize
    up_bytes = up_dtype.itemsize

    TB = _pick_tb(BC, C, h_lr, shared, tb_max)
    gx = 1 if shared else TB
    n_groups = BC // TB

    vmem_limit, budget = _vmem_budget()
    th = _pick_th(h_hr, w_hr, h_lr, w_lr, TB, gx, hr_bytes, out_bytes,
                  up_bytes, budget)
    n_tiles = pl.cdiv(h_hr, th)

    # Low-res tensors as 2-D (planes*Hl, Wl) f32 rows; HR keeps its dtype
    # (no f32 upcast in HBM -> half the traffic for bf16 inputs).
    x_lr2 = x_lr.reshape(-1, w_lr).astype(jnp.float32)
    y_lr2 = y_lr.reshape(BC * h_lr, w_lr).astype(jnp.float32)
    x_hr3 = x_hr.reshape(-1, h_hr, w_hr)

    nbh = _normalized_box_matrix(h_lr, radius)
    nbhd = jnp.asarray(np.kron(np.eye(TB, dtype=np.float32), nbh))       # block-diag
    nbwt = jnp.asarray(_normalized_box_matrix(w_lr, radius).T)           # (Wl,Wl)
    uh = jnp.asarray(_bicubic_matrix(h_hr, h_lr)).astype(up_dtype)       # (Hh,Hl)
    uwt = jnp.asarray(_bicubic_matrix(w_hr, w_lr).T).astype(up_dtype)    # (Wl,Wh)

    kernel = _make_kernel(tb=TB, gx=gx, hl=h_lr, wl=w_lr, wh=w_hr, eps=eps,
                          up_dtype=up_dtype, shared=shared,
                          approx_recip=(up_dtype == jnp.dtype(jnp.bfloat16)))

    if shared:
        xlr_map = lambda g, j: ((g * TB) // C, 0)
        xhr_map = lambda g, j: ((g * TB) // C, j, 0)
    else:
        xlr_map = lambda g, j: (g, 0)
        xhr_map = lambda g, j: (g, j, 0)

    out = pl.pallas_call(
        kernel,
        out_shape=jax.ShapeDtypeStruct((BC, h_hr, w_hr), out_dtype),
        grid_spec=pltpu.PrefetchScalarGridSpec(
            num_scalar_prefetch=0,
            grid=(n_groups, n_tiles),
            in_specs=[
                pl.BlockSpec((gx * h_lr, w_lr), xlr_map),                # x_lr
                pl.BlockSpec((TB * h_lr, w_lr), lambda g, j: (g, 0)),    # y_lr
                pl.BlockSpec((gx, th, w_hr), xhr_map),                   # x_hr
                pl.BlockSpec((TB * h_lr, TB * h_lr), lambda g, j: (0, 0)),  # Bh bd
                pl.BlockSpec((w_lr, w_lr), lambda g, j: (0, 0)),         # Bw^T
                pl.BlockSpec((th, h_lr), lambda g, j: (j, 0)),           # Uh tile
                pl.BlockSpec((w_lr, w_hr), lambda g, j: (0, 0)),         # Uw^T
            ],
            out_specs=pl.BlockSpec((TB, th, w_hr), lambda g, j: (g, j, 0)),
            # W-upsampled [A planes | b planes], leading-dim indexed.
            scratch_shapes=[pltpu.VMEM((2 * TB, h_lr, w_hr), up_dtype)],
        ),
        compiler_params=pltpu.CompilerParams(
            dimension_semantics=("parallel", "arbitrary"),
            vmem_limit_bytes=vmem_limit,
        ),
    )(x_lr2, y_lr2, x_hr3, nbhd, nbwt, uh, uwt)

    return out.reshape(n_x, C, h_hr, w_hr)


# ----------------------------------------------------------------------------
# Pure-JAX reference (matches the PyTorch math: box sums / N, bicubic upsample)
# ----------------------------------------------------------------------------
def _reference(x_lr, y_lr, x_hr, *, radius, eps):
    n, cx, h_lr, w_lr = x_lr.shape
    _, cy, _, _ = y_lr.shape
    _, _, h_hr, w_hr = x_hr.shape
    if cx == 1 and cy > 1:
        x_lr = jnp.broadcast_to(x_lr, (n, cy, h_lr, w_lr))
        x_hr = jnp.broadcast_to(x_hr, (n, cy, h_hr, w_hr))

    hp = lax.Precision.HIGHEST
    Bh = jnp.asarray(_box_matrix(h_lr, radius))
    Bw = jnp.asarray(_box_matrix(w_lr, radius))
    Uh = jnp.asarray(_bicubic_matrix(h_hr, h_lr))
    Uw = jnp.asarray(_bicubic_matrix(w_hr, w_lr))

    def box(v):
        return jnp.einsum("ij,ncjk,lk->ncil", Bh, v, Bw, precision=hp)

    def up(v):
        return jnp.einsum("ij,ncjk,lk->ncil", Uh, v, Uw, precision=hp)

    x = x_lr.astype(jnp.float32)
    y = y_lr.astype(jnp.float32)
    N = box(jnp.ones_like(x[:1, :1]))
    mean_x = box(x) / N
    mean_y = box(y) / N
    cov_xy = box(x * y) / N - mean_x * mean_y
    var_x = box(x * x) / N - mean_x * mean_x
    A = cov_xy / (var_x + eps)
    b = mean_y - A * mean_x
    return up(A) * x_hr.astype(jnp.float32) + up(b)


# ----------------------------------------------------------------------------
if __name__ == "__main__":
    radius = 2
    eps = 1e-8
    B, C = 2, 4
    Hl = Wl = 16
    Hh = Wh = 32

    key = jax.random.PRNGKey(0)
    k1, k2, k3 = jax.random.split(key, 3)
    x_lr = jax.random.uniform(k1, (B, C, Hl, Wl), dtype=jnp.float32)
    y_lr = jax.random.uniform(k2, (B, C, Hl, Wl), dtype=jnp.float32)
    x_hr = jax.random.uniform(k3, (B, C, Hh, Wh), dtype=jnp.float32)

    ref = _reference(x_lr, y_lr, x_hr, radius=radius, eps=eps)

    # Strict f32 interpolation path.
    out = fast_guided_filter(x_lr, y_lr, x_hr, radius=radius, eps=eps,
                             upsample_dtype=jnp.float32)
    out = jax.block_until_ready(out)
    assert out.shape == (B, C, Hh, Wh)
    np.testing.assert_allclose(np.asarray(out), np.asarray(ref),
                               rtol=5e-4, atol=5e-4)

    # Default path: bf16 operands for the interpolation matmuls and the A/b
    # scratch (2x MXU rate, half the scratch); box / cov / var stay f32, so
    # only the smooth A/b maps lose a little precision -> looser tolerance.
    out_bf16 = fast_guided_filter(x_lr, y_lr, x_hr, radius=radius, eps=eps)
    out_bf16 = jax.block_until_ready(out_bf16)
    np.testing.assert_allclose(np.asarray(out_bf16), np.asarray(ref),
                               rtol=5e-2, atol=5e-2)

    # Single-channel guide (c_x == 1): the guide is NOT broadcast in HBM; the
    # BlockSpec index_map reuses one guide plane per batch element.
    x_lr1 = x_lr[:, :1]
    x_hr1 = x_hr[:, :1]
    ref1 = _reference(x_lr1, y_lr, x_hr1, radius=radius, eps=eps)
    out1 = fast_guided_filter(x_lr1, y_lr, x_hr1, radius=radius, eps=eps,
                              upsample_dtype=jnp.float32)
    out1 = jax.block_until_ready(out1)
    assert out1.shape == (B, C, Hh, Wh)
    np.testing.assert_allclose(np.asarray(out1), np.asarray(ref1),
                               rtol=5e-4, atol=5e-4)

    print("KERNEL_OK")
</pallas_src>

<mosaic_0001>
module attributes {stable_mosaic.version = 11 : i64} {
  func.func @kernel(%arg0: i32, %arg1: i32, %arg2: memref<128x16xf32, #tpu.memory_space<vmem>>, %arg3: memref<128x16xf32, #tpu.memory_space<vmem>>, %arg4: memref<8x32x32xf32, #tpu.memory_space<vmem>>, %arg5: memref<128x128xf32, #tpu.memory_space<vmem>>, %arg6: memref<16x16xf32, #tpu.memory_space<vmem>>, %arg7: memref<32x16xf32, #tpu.memory_space<vmem>>, %arg8: memref<16x32xf32, #tpu.memory_space<vmem>>, %arg9: memref<8x32x32xf32, #tpu.memory_space<vmem>>, %arg10: memref<16x16x32xf32, #tpu.memory_space<vmem>>) attributes {dimension_semantics = [#tpu.dimension_semantics<parallel>, #tpu.dimension_semantics<arbitrary>], iteration_bounds = array<i64: 1, 1>, scalar_prefetch = 0 : i64, scratch_operands = 1 : i64, tpu.core_type = #tpu.core_type<tc>, window_params = [{transform_indices = @transform_0, window_bounds = array<i64: 128, 16>}, {transform_indices = @transform_1, window_bounds = array<i64: 128, 16>}, {transform_indices = @transform_2, window_bounds = array<i64: 8, 32, 32>}, {pipeline_mode = #tpu.pipeline_mode<synchronous>, transform_indices = @transform_3, window_bounds = array<i64: 128, 128>}, {pipeline_mode = #tpu.pipeline_mode<synchronous>, transform_indices = @transform_4, window_bounds = array<i64: 16, 16>}, {transform_indices = @transform_5, window_bounds = array<i64: 32, 16>}, {pipeline_mode = #tpu.pipeline_mode<synchronous>, transform_indices = @transform_6, window_bounds = array<i64: 16, 32>}, {transform_indices = @transform_7, window_bounds = array<i64: 8, 32, 32>}]} {
    %c0_i32 = arith.constant 0 : i32
    %0 = arith.cmpi eq, %arg1, %c0_i32 : i32
    %1 = arith.extui %0 : i1 to i32
    %c0_i32_0 = arith.constant 0 : i32
    %2 = arith.cmpi ne, %1, %c0_i32_0 : i32
    scf.if %2 {
      %c0_98 = arith.constant 0 : index
      %c0_99 = arith.constant 0 : index
      %108 = vector.load %arg2[%c0_98, %c0_99] : memref<128x16xf32, #tpu.memory_space<vmem>>, vector<128x16xf32>
      %c0_100 = arith.constant 0 : index
      %c0_101 = arith.constant 0 : index
      %109 = vector.load %arg3[%c0_100, %c0_101] : memref<128x16xf32, #tpu.memory_space<vmem>>, vector<128x16xf32>
      %110 = arith.mulf %108, %109 : vector<128x16xf32>
      %111 = arith.mulf %108, %108 : vector<128x16xf32>
      %112 = tpu.concatenate %108, %109, %110, %111 in 0 : vector<128x16xf32>, vector<128x16xf32>, vector<128x16xf32>, vector<128x16xf32> -> vector<512x16xf32>
      %c0_102 = arith.constant 0 : index
      %c0_103 = arith.constant 0 : index
      %113 = vector.load %arg6[%c0_102, %c0_103] : memref<16x16xf32, #tpu.memory_space<vmem>>, vector<16x16xf32>
      %cst_104 = arith.constant dense<0.000000e+00> : vector<512x16xf32>
      %114 = tpu.matmul %112, %113, %cst_104 {dimension_numbers = #tpu.dot_dimension_numbers<[1], [0], [0], [1], [0, 0, 1, 1], [], []>} : vector<512x16xf32>, vector<16x16xf32>, vector<512x16xf32> -> vector<512x16xf32>
      %c0_105 = arith.constant 0 : index
      %c0_106 = arith.constant 0 : index
      %115 = vector.load %arg5[%c0_105, %c0_106] : memref<128x128xf32, #tpu.memory_space<vmem>>, vector<128x128xf32>
      %116 = vector.extract_strided_slice %114 {offsets = [0, 0], sizes = [128, 16], strides = [1, 1]} : vector<512x16xf32> to vector<128x16xf32>
      %cst_107 = arith.constant dense<0.000000e+00> : vector<128x16xf32>
      %117 = tpu.matmul %115, %116, %cst_107 {dimension_numbers = #tpu.dot_dimension_numbers<[1], [0], [0], [1], [0, 0, 1, 1], [], []>} : vector<128x128xf32>, vector<128x16xf32>, vector<128x16xf32> -> vector<128x16xf32>
      %118 = vector.extract_strided_slice %114 {offsets = [128, 0], sizes = [128, 16], strides = [1, 1]} : vector<512x16xf32> to vector<128x16xf32>
      %cst_108 = arith.constant dense<0.000000e+00> : vector<128x16xf32>
      %119 = tpu.matmul %115, %118, %cst_108 {dimension_numbers = #tpu.dot_dimension_numbers<[1], [0], [0], [1], [0, 0, 1, 1], [], []>} : vector<128x128xf32>, vector<128x16xf32>, vector<128x16xf32> -> vector<128x16xf32>
      %120 = vector.extract_strided_slice %114 {offsets = [256, 0], sizes = [128, 16], strides = [1, 1]} : vector<512x16xf32> to vector<128x16xf32>
      %cst_109 = arith.constant dense<0.000000e+00> : vector<128x16xf32>
      %121 = tpu.matmul %115, %120, %cst_109 {dimension_numbers = #tpu.dot_dimension_numbers<[1], [0], [0], [1], [0, 0, 1, 1], [], []>} : vector<128x128xf32>, vector<128x16xf32>, vector<128x16xf32> -> vector<128x16xf32>
      %122 = vector.extract_strided_slice %114 {offsets = [384, 0], sizes = [128, 16], strides = [1, 1]} : vector<512x16xf32> to vector<128x16xf32>
      %cst_110 = arith.constant dense<0.000000e+00> : vector<128x16xf32>
      %123 = tpu.matmul %115, %122, %cst_110 {dimension_numbers = #tpu.dot_dimension_numbers<[1], [0], [0], [1], [0, 0, 1, 1], [], []>} : vector<128x128xf32>, vector<128x16xf32>, vector<128x16xf32> -> vector<128x16xf32>
      %124 = arith.mulf %117, %119 : vector<128x16xf32>
      %125 = arith.subf %121, %124 : vector<128x16xf32>
      %126 = arith.mulf %117, %117 : vector<128x16xf32>
      %127 = arith.subf %123, %126 : vector<128x16xf32>
      %cst_111 = arith.constant 9.99999993E-9 : f32
      %128 = vector.broadcast %cst_111 : f32 to vector<128x16xf32>
      %129 = arith.addf %127, %128 : vector<128x16xf32>
      %130 = tpu.reciprocal %129 : vector<128x16xf32> -> vector<128x16xf32>
      %131 = arith.mulf %125, %130 : vector<128x16xf32>
      %132 = arith.mulf %131, %117 : vector<128x16xf32>
      %133 = arith.subf %119, %132 : vector<128x16xf32>
      %134 = tpu.concatenate %131, %133 in 0 : vector<128x16xf32>, vector<128x16xf32> -> vector<256x16xf32>
      %c0_112 = arith.constant 0 : index
      %c0_113 = arith.constant 0 : index
      %135 = vector.load %arg8[%c0_112, %c0_113] : memref<16x32xf32, #tpu.memory_space<vmem>>, vector<16x32xf32>
      %cst_114 = arith.constant dense<0.000000e+00> : vector<256x32xf32>
      %136 = tpu.matmul %134, %135, %cst_114 {dimension_numbers = #tpu.dot_dimension_numbers<[1], [0], [0], [1], [0, 0, 1, 1], [], []>} : vector<256x16xf32>, vector<16x32xf32>, vector<256x32xf32> -> vector<256x32xf32>
      %137 = vector.shape_cast %136 : vector<256x32xf32> to vector<16x16x32xf32>
      %c0_115 = arith.constant 0 : index
      %c0_116 = arith.constant 0 : index
      %c0_117 = arith.constant 0 : index
      %138 = vector.load %arg10[%c0_115, %c0_116, %c0_117] : memref<16x16x32xf32, #tpu.memory_space<vmem>>, vector<16x16x32xf32>
      tpu.vector_store %arg10[%c0_115, %c0_116, %c0_117], %137 {strides = array<i32>} : memref<16x16x32xf32, #tpu.memory_space<vmem>>, vector<16x16x32xf32>,
    } else {
    }
    %c0 = arith.constant 0 : index
    %c0_1 = arith.constant 0 : index
    %3 = vector.load %arg7[%c0, %c0_1] : memref<32x16xf32, #tpu.memory_space<vmem>>, vector<32x16xf32>
    %c0_2 = arith.constant 0 : index
    %c0_3 = arith.constant 0 : index
    %c0_4 = arith.constant 0 : index
    %4 = vector.load %arg10[%c0_2, %c0_3, %c0_4] : memref<16x16x32xf32, #tpu.memory_space<vmem>>, vector<1x16x32xf32>
    %5 = vector.shape_cast %4 : vector<1x16x32xf32> to vector<16x32xf32>
    %cst = arith.constant dense<0.000000e+00> : vector<32x32xf32>
    %6 = tpu.matmul %3, %5, %cst {dimension_numbers = #tpu.dot_dimension_numbers<[1], [0], [0], [1], [0, 0, 1, 1], [], []>} : vector<32x16xf32>, vector<16x32xf32>, vector<32x32xf32> -> vector<32x32xf32>
    %c8 = arith.constant 8 : index
    %c0_5 = arith.constant 0 : index
    %c0_6 = arith.constant 0 : index
    %7 = vector.load %arg10[%c8, %c0_5, %c0_6] : memref<16x16x32xf32, #tpu.memory_space<vmem>>, vector<1x16x32xf32>
    %8 = vector.shape_cast %7 : vector<1x16x32xf32> to vector<16x32xf32>
    %cst_7 = arith.constant dense<0.000000e+00> : vector<32x32xf32>
    %9 = tpu.matmul %3, %8, %cst_7 {dimension_numbers = #tpu.dot_dimension_numbers<[1], [0], [0], [1], [0, 0, 1, 1], [], []>} : vector<32x16xf32>, vector<16x32xf32>, vector<32x32xf32> -> vector<32x32xf32>
    %c0_8 = arith.constant 0 : index
    %c0_9 = arith.constant 0 : index
    %c0_10 = arith.constant 0 : index
    %10 = vector.load %arg4[%c0_8, %c0_9, %c0_10] : memref<8x32x32xf32, #tpu.memory_space<vmem>>, vector<1x32x32xf32>
    %11 = vector.shape_cast %10 : vector<1x32x32xf32> to vector<32x32xf32>
    %12 = arith.mulf %6, %11 : vector<32x32xf32>
    %13 = arith.addf %12, %9 : vector<32x32xf32>
    %c0_11 = arith.constant 0 : index
    %c0_12 = arith.constant 0 : index
    %c0_13 = arith.constant 0 : index
    %14 = vector.load %arg9[%c0_11, %c0_12, %c0_13] : memref<8x32x32xf32, #tpu.memory_space<vmem>>, vector<1x32x32xf32>
    %15 = vector.shape_cast %14 : vector<1x32x32xf32> to vector<32x32xf32>
    %16 = vector.shape_cast %13 : vector<32x32xf32> to vector<1x32x32xf32>
    tpu.vector_store %arg9[%c0_11, %c0_12, %c0_13], %16 {strides = array<i32>} : memref<8x32x32xf32, #tpu.memory_space<vmem>>, vector<1x32x32xf32>,
    %c1 = arith.constant 1 : index
    %c0_14 = arith.constant 0 : index
    %c0_15 = arith.constant 0 : index
    %17 = vector.load %arg10[%c1, %c0_14, %c0_15] : memref<16x16x32xf32, #tpu.memory_space<vmem>>, vector<1x16x32xf32>
    %18 = vector.shape_cast %17 : vector<1x16x32xf32> to vector<16x32xf32>
    %cst_16 = arith.constant dense<0.000000e+00> : vector<32x32xf32>
    %19 = tpu.matmul %3, %18, %cst_16 {dimension_numbers = #tpu.dot_dimension_numbers<[1], [0], [0], [1], [0, 0, 1, 1], [], []>} : vector<32x16xf32>, vector<16x32xf32>, vector<32x32xf32> -> vector<32x32xf32>
    %c9 = arith.constant 9 : index
    %c0_17 = arith.constant 0 : index
    %c0_18 = arith.constant 0 : index
    %20 = vector.load %arg10[%c9, %c0_17, %c0_18] : memref<16x16x32xf32, #tpu.memory_space<vmem>>, vector<1x16x32xf32>
    %21 = vector.shape_cast %20 : vector<1x16x32xf32> to vector<16x32xf32>
    %cst_19 = arith.constant dense<0.000000e+00> : vector<32x32xf32>
    %22 = tpu.matmul %3, %21, %cst_19 {dimension_numbers = #tpu.dot_dimension_numbers<[1], [0], [0], [1], [0, 0, 1, 1], [], []>} : vector<32x16xf32>, vector<16x32xf32>, vector<32x32xf32> -> vector<32x32xf32>
    %c1_20 = arith.constant 1 : index
    %c0_21 = arith.constant 0 : index
    %c0_22 = arith.constant 0 : index
    %23 = vector.load %arg4[%c1_20, %c0_21, %c0_22] : memref<8x32x32xf32, #tpu.memory_space<vmem>>, vector<1x32x32xf32>
    %24 = vector.shape_cast %23 : vector<1x32x32xf32> to vector<32x32xf32>
    %25 = arith.mulf %19, %24 : vector<32x32xf32>
    %26 = arith.addf %25, %22 : vector<32x32xf32>
    %c1_23 = arith.constant 1 : index
    %c0_24 = arith.constant 0 : index
    %c0_25 = arith.constant 0 : index
    %27 = vector.load %arg9[%c1_23, %c0_24, %c0_25] : memref<8x32x32xf32, #tpu.memory_space<vmem>>, vector<1x32x32xf32>
    %28 = vector.shape_cast %27 : vector<1x32x32xf32> to vector<32x32xf32>
    %29 = vector.shape_cast %26 : vector<32x32xf32> to vector<1x32x32xf32>
    tpu.vector_store %arg9[%c1_23, %c0_24, %c0_25], %29 {strides = array<i32>} : memref<8x32x32xf32, #tpu.memory_space<vmem>>, vector<1x32x32xf32>,
    %c2 = arith.constant 2 : index
    %c0_26 = arith.constant 0 : index
    %c0_27 = arith.constant 0 : index
    %30 = vector.load %arg10[%c2, %c0_26, %c0_27] : memref<16x16x32xf32, #tpu.memory_space<vmem>>, vector<1x16x32xf32>
    %31 = vector.shape_cast %30 : vector<1x16x32xf32> to vector<16x32xf32>
    %cst_28 = arith.constant dense<0.000000e+00> : vector<32x32xf32>
    %32 = tpu.matmul %3, %31, %cst_28 {dimension_numbers = #tpu.dot_dimension_numbers<[1], [0], [0], [1], [0, 0, 1, 1], [], []>} : vector<32x16xf32>, vector<16x32xf32>, vector<32x32xf32> -> vector<32x32xf32>
    %c10 = arith.constant 10 : index
    %c0_29 = arith.constant 0 : index
    %c0_30 = arith.constant 0 : index
    %33 = vector.load %arg10[%c10, %c0_29, %c0_30] : memref<16x16x32xf32, #tpu.memory_space<vmem>>, vector<1x16x32xf32>
    %34 = vector.shape_cast %33 : vector<1x16x32xf32> to vector<16x32xf32>
    %cst_31 = arith.constant dense<0.000000e+00> : vector<32x32xf32>
    %35 = tpu.matmul %3, %34, %cst_31 {dimension_numbers = #tpu.dot_dimension_numbers<[1], [0], [0], [1], [0, 0, 1, 1], [], []>} : vector<32x16xf32>, vector<16x32xf32>, vector<32x32xf32> -> vector<32x32xf32>
    %c2_32 = arith.constant 2 : index
    %c0_33 = arith.constant 0 : index
    %c0_34 = arith.constant 0 : index
    %36 = vector.load %arg4[%c2_32, %c0_33, %c0_34] : memref<8x32x32xf32, #tpu.memory_space<vmem>>, vector<1x32x32xf32>
    %37 = vector.shape_cast %36 : vector<1x32x32xf32> to vector<32x32xf32>
    %38 = arith.mulf %32, %37 : vector<32x32xf32>
    %39 = arith.addf %38, %35 : vector<32x32xf32>
    %c2_35 = arith.constant 2 : index
    %c0_36 = arith.constant 0 : index
    %c0_37 = arith.constant 0 : index
    %40 = vector.load %arg9[%c2_35, %c0_36, %c0_37] : memref<8x32x32xf32, #tpu.memory_space<vmem>>, vector<1x32x32xf32>
    %41 = vector.shape_cast %40 : vector<1x32x32xf32> to vector<32x32xf32>
    %42 = vector.shape_cast %39 : vector<32x32xf32> to vector<1x32x32xf32>
    tpu.vector_store %arg9[%c2_35, %c0_36, %c0_37], %42 {strides = array<i32>} : memref<8x32x32xf32, #tpu.memory_space<vmem>>, vector<1x32x32xf32>,
    %c3 = arith.constant 3 : index
    %c0_38 = arith.constant 0 : index
    %c0_39 = arith.constant 0 : index
    %43 = vector.load %arg10[%c3, %c0_38, %c0_39] : memref<16x16x32xf32, #tpu.memory_space<vmem>>, vector<1x16x32xf32>
    %44 = vector.shape_cast %43 : vector<1x16x32xf32> to vector<16x32xf32>
    %cst_40 = arith.constant dense<0.000000e+00> : vector<32x32xf32>
    %45 = tpu.matmul %3, %44, %cst_40 {dimension_numbers = #tpu.dot_dimension_numbers<[1], [0], [0], [1], [0, 0, 1, 1], [], []>} : vector<32x16xf32>, vector<16x32xf32>, vector<32x32xf32> -> vector<32x32xf32>
    %c11 = arith.constant 11 : index
    %c0_41 = arith.constant 0 : index
    %c0_42 = arith.constant 0 : index
    %46 = vector.load %arg10[%c11, %c0_41, %c0_42] : memref<16x16x32xf32, #tpu.memory_space<vmem>>, vector<1x16x32xf32>
    %47 = vector.shape_cast %46 : vector<1x16x32xf32> to vector<16x32xf32>
    %cst_43 = arith.constant dense<0.000000e+00> : vector<32x32xf32>
    %48 = tpu.matmul %3, %47, %cst_43 {dimension_numbers = #tpu.dot_dimension_numbers<[1], [0], [0], [1], [0, 0, 1, 1], [], []>} : vector<32x16xf32>, vector<16x32xf32>, vector<32x32xf32> -> vector<32x32xf32>
    %c3_44 = arith.constant 3 : index
    %c0_45 = arith.constant 0 : index
    %c0_46 = arith.constant 0 : index
    %49 = vector.load %arg4[%c3_44, %c0_45, %c0_46] : memref<8x32x32xf32, #tpu.memory_space<vmem>>, vector<1x32x32xf32>
    %50 = vector.shape_cast %49 : vector<1x32x32xf32> to vector<32x32xf32>
    %51 = arith.mulf %45, %50 : vector<32x32xf32>
    %52 = arith.addf %51, %48 : vector<32x32xf32>
    %c3_47 = arith.constant 3 : index
    %c0_48 = arith.constant 0 : index
    %c0_49 = arith.constant 0 : index
    %53 = vector.load %arg9[%c3_47, %c0_48, %c0_49] : memref<8x32x32xf32, #tpu.memory_space<vmem>>, vector<1x32x32xf32>
    %54 = vector.shape_cast %53 : vector<1x32x32xf32> to vector<32x32xf32>
    %55 = vector.shape_cast %52 : vector<32x32xf32> to vector<1x32x32xf32>
    tpu.vector_store %arg9[%c3_47, %c0_48, %c0_49], %55 {strides = array<i32>} : memref<8x32x32xf32, #tpu.memory_space<vmem>>, vector<1x32x32xf32>,
    %c4 = arith.constant 4 : index
    %c0_50 = arith.constant 0 : index
    %c0_51 = arith.constant 0 : index
    %56 = vector.load %arg10[%c4, %c0_50, %c0_51] : memref<16x16x32xf32, #tpu.memory_space<vmem>>, vector<1x16x32xf32>
    %57 = vector.shape_cast %56 : vector<1x16x32xf32> to vector<16x32xf32>
    %cst_52 = arith.constant dense<0.000000e+00> : vector<32x32xf32>
    %58 = tpu.matmul %3, %57, %cst_52 {dimension_numbers = #tpu.dot_dimension_numbers<[1], [0], [0], [1], [0, 0, 1, 1], [], []>} : vector<32x16xf32>, vector<16x32xf32>, vector<32x32xf32> -> vector<32x32xf32>
    %c12 = arith.constant 12 : index
    %c0_53 = arith.constant 0 : index
    %c0_54 = arith.constant 0 : index
    %59 = vector.load %arg10[%c12, %c0_53, %c0_54] : memref<16x16x32xf32, #tpu.memory_space<vmem>>, vector<1x16x32xf32>
    %60 = vector.shape_cast %59 : vector<1x16x32xf32> to vector<16x32xf32>
    %cst_55 = arith.constant dense<0.000000e+00> : vector<32x32xf32>
    %61 = tpu.matmul %3, %60, %cst_55 {dimension_numbers = #tpu.dot_dimension_numbers<[1], [0], [0], [1], [0, 0, 1, 1], [], []>} : vector<32x16xf32>, vector<16x32xf32>, vector<32x32xf32> -> vector<32x32xf32>
    %c4_56 = arith.constant 4 : index
    %c0_57 = arith.constant 0 : index
    %c0_58 = arith.constant 0 : index
    %62 = vector.load %arg4[%c4_56, %c0_57, %c0_58] : memref<8x32x32xf32, #tpu.memory_space<vmem>>, vector<1x32x32xf32>
    %63 = vector.shape_cast %62 : vector<1x32x32xf32> to vector<32x32xf32>
    %64 = arith.mulf %58, %63 : vector<32x32xf32>
    %65 = arith.addf %64, %61 : vector<32x32xf32>
    %c4_59 = arith.constant 4 : index
    %c0_60 = arith.constant 0 : index
    %c0_61 = arith.constant 0 : index
    %66 = vector.load %arg9[%c4_59, %c0_60, %c0_61] : memref<8x32x32xf32, #tpu.memory_space<vmem>>, vector<1x32x32xf32>
    %67 = vector.shape_cast %66 : vector<1x32x32xf32> to vector<32x32xf32>
    %68 = vector.shape_cast %65 : vector<32x32xf32> to vector<1x32x32xf32>
    tpu.vector_store %arg9[%c4_59, %c0_60, %c0_61], %68 {strides = array<i32>} : memref<8x32x32xf32, #tpu.memory_space<vmem>>, vector<1x32x32xf32>,
    %c5 = arith.constant 5 : index
    %c0_62 = arith.constant 0 : index
    %c0_63 = arith.constant 0 : index
    %69 = vector.load %arg10[%c5, %c0_62, %c0_63] : memref<16x16x32xf32, #tpu.memory_space<vmem>>, vector<1x16x32xf32>
    %70 = vector.shape_cast %69 : vector<1x16x32xf32> to vector<16x32xf32>
    %cst_64 = arith.constant dense<0.000000e+00> : vector<32x32xf32>
    %71 = tpu.matmul %3, %70, %cst_64 {dimension_numbers = #tpu.dot_dimension_numbers<[1], [0], [0], [1], [0, 0, 1, 1], [], []>} : vector<32x16xf32>, vector<16x32xf32>, vector<32x32xf32> -> vector<32x32xf32>
    %c13 = arith.constant 13 : index
    %c0_65 = arith.constant 0 : index
    %c0_66 = arith.constant 0 : index
    %72 = vector.load %arg10[%c13, %c0_65, %c0_66] : memref<16x16x32xf32, #tpu.memory_space<vmem>>, vector<1x16x32xf32>
    %73 = vector.shape_cast %72 : vector<1x16x32xf32> to vector<16x32xf32>
    %cst_67 = arith.constant dense<0.000000e+00> : vector<32x32xf32>
    %74 = tpu.matmul %3, %73, %cst_67 {dimension_numbers = #tpu.dot_dimension_numbers<[1], [0], [0], [1], [0, 0, 1, 1], [], []>} : vector<32x16xf32>, vector<16x32xf32>, vector<32x32xf32> -> vector<32x32xf32>
    %c5_68 = arith.constant 5 : index
    %c0_69 = arith.constant 0 : index
    %c0_70 = arith.constant 0 : index
    %75 = vector.load %arg4[%c5_68, %c0_69, %c0_70] : memref<8x32x32xf32, #tpu.memory_space<vmem>>, vector<1x32x32xf32>
    %76 = vector.shape_cast %75 : vector<1x32x32xf32> to vector<32x32xf32>
    %77 = arith.mulf %71, %76 : vector<32x32xf32>
    %78 = arith.addf %77, %74 : vector<32x32xf32>
    %c5_71 = arith.constant 5 : index
    %c0_72 = arith.constant 0 : index
    %c0_73 = arith.constant 0 : index
    %79 = vector.load %arg9[%c5_71, %c0_72, %c0_73] : memref<8x32x32xf32, #tpu.memory_space<vmem>>, vector<1x32x32xf32>
    %80 = vector.shape_cast %79 : vector<1x32x32xf32> to vector<32x32xf32>
    %81 = vector.shape_cast %78 : vector<32x32xf32> to vector<1x32x32xf32>
    tpu.vector_store %arg9[%c5_71, %c0_72, %c0_73], %81 {strides = array<i32>} : memref<8x32x32xf32, #tpu.memory_space<vmem>>, vector<1x32x32xf32>,
    %c6 = arith.constant 6 : index
    %c0_74 = arith.constant 0 : index
    %c0_75 = arith.constant 0 : index
    %82 = vector.load %arg10[%c6, %c0_74, %c0_75] : memref<16x16x32xf32, #tpu.memory_space<vmem>>, vector<1x16x32xf32>
    %83 = vector.shape_cast %82 : vector<1x16x32xf32> to vector<16x32xf32>
    %cst_76 = arith.constant dense<0.000000e+00> : vector<32x32xf32>
    %84 = tpu.matmul %3, %83, %cst_76 {dimension_numbers = #tpu.dot_dimension_numbers<[1], [0], [0], [1], [0, 0, 1, 1], [], []>} : vector<32x16xf32>, vector<16x32xf32>, vector<32x32xf32> -> vector<32x32xf32>
    %c14 = arith.constant 14 : index
    %c0_77 = arith.constant 0 : index
    %c0_78 = arith.constant 0 : index
    %85 = vector.load %arg10[%c14, %c0_77, %c0_78] : memref<16x16x32xf32, #tpu.memory_space<vmem>>, vector<1x16x32xf32>
    %86 = vector.shape_cast %85 : vector<1x16x32xf32> to vector<16x32xf32>
    %cst_79 = arith.constant dense<0.000000e+00> : vector<32x32xf32>
    %87 = tpu.matmul %3, %86, %cst_79 {dimension_numbers = #tpu.dot_dimension_numbers<[1], [0], [0], [1], [0, 0, 1, 1], [], []>} : vector<32x16xf32>, vector<16x32xf32>, vector<32x32xf32> -> vector<32x32xf32>
    %c6_80 = arith.constant 6 : index
    %c0_81 = arith.constant 0 : index
    %c0_82 = arith.constant 0 : index
    %88 = vector.load %arg4[%c6_80, %c0_81, %c0_82] : memref<8x32x32xf32, #tpu.memory_space<vmem>>, vector<1x32x32xf32>
    %89 = vector.shape_cast %88 : vector<1x32x32xf32> to vector<32x32xf32>
    %90 = arith.mulf %84, %89 : vector<32x32xf32>
    %91 = arith.addf %90, %87 : vector<32x32xf32>
    %c6_83 = arith.constant 6 : index
    %c0_84 = arith.constant 0 : index
    %c0_85 = arith.constant 0 : index
    %92 = vector.load %arg9[%c6_83, %c0_84, %c0_85] : memref<8x32x32xf32, #tpu.memory_space<vmem>>, vector<1x32x32xf32>
    %93 = vector.shape_cast %92 : vector<1x32x32xf32> to vector<32x32xf32>
    %94 = vector.shape_cast %91 : vector<32x32xf32> to vector<1x32x32xf32>
    tpu.vector_store %arg9[%c6_83, %c0_84, %c0_85], %94 {strides = array<i32>} : memref<8x32x32xf32, #tpu.memory_space<vmem>>, vector<1x32x32xf32>,
    %c7 = arith.constant 7 : index
    %c0_86 = arith.constant 0 : index
    %c0_87 = arith.constant 0 : index
    %95 = vector.load %arg10[%c7, %c0_86, %c0_87] : memref<16x16x32xf32, #tpu.memory_space<vmem>>, vector<1x16x32xf32>
    %96 = vector.shape_cast %95 : vector<1x16x32xf32> to vector<16x32xf32>
    %cst_88 = arith.constant dense<0.000000e+00> : vector<32x32xf32>
    %97 = tpu.matmul %3, %96, %cst_88 {dimension_numbers = #tpu.dot_dimension_numbers<[1], [0], [0], [1], [0, 0, 1, 1], [], []>} : vector<32x16xf32>, vector<16x32xf32>, vector<32x32xf32> -> vector<32x32xf32>
    %c15 = arith.constant 15 : index
    %c0_89 = arith.constant 0 : index
    %c0_90 = arith.constant 0 : index
    %98 = vector.load %arg10[%c15, %c0_89, %c0_90] : memref<16x16x32xf32, #tpu.memory_space<vmem>>, vector<1x16x32xf32>
    %99 = vector.shape_cast %98 : vector<1x16x32xf32> to vector<16x32xf32>
    %cst_91 = arith.constant dense<0.000000e+00> : vector<32x32xf32>
    %100 = tpu.matmul %3, %99, %cst_91 {dimension_numbers = #tpu.dot_dimension_numbers<[1], [0], [0], [1], [0, 0, 1, 1], [], []>} : vector<32x16xf32>, vector<16x32xf32>, vector<32x32xf32> -> vector<32x32xf32>
    %c7_92 = arith.constant 7 : index
    %c0_93 = arith.constant 0 : index
    %c0_94 = arith.constant 0 : index
    %101 = vector.load %arg4[%c7_92, %c0_93, %c0_94] : memref<8x32x32xf32, #tpu.memory_space<vmem>>, vector<1x32x32xf32>
    %102 = vector.shape_cast %101 : vector<1x32x32xf32> to vector<32x32xf32>
    %103 = arith.mulf %97, %102 : vector<32x32xf32>
    %104 = arith.addf %103, %100 : vector<32x32xf32>
    %c7_95 = arith.constant 7 : index
    %c0_96 = arith.constant 0 : index
    %c0_97 = arith.constant 0 : index
    %105 = vector.load %arg9[%c7_95, %c0_96, %c0_97] : memref<8x32x32xf32, #tpu.memory_space<vmem>>, vector<1x32x32xf32>
    %106 = vector.shape_cast %105 : vector<1x32x32xf32> to vector<32x32xf32>
    %107 = vector.shape_cast %104 : vector<32x32xf32> to vector<1x32x32xf32>
    tpu.vector_store %arg9[%c7_95, %c0_96, %c0_97], %107 {strides = array<i32>} : memref<8x32x32xf32, #tpu.memory_space<vmem>>, vector<1x32x32xf32>,
    return
  }
  func.func @transform_0(%arg0: i32, %arg1: i32) -> (i32, i32) {
    %c0_i32 = arith.constant 0 : i32
    %c0_i32_0 = arith.constant 0 : i32
    return %arg0, %c0_i32 : i32, i32
  }
  func.func @transform_1(%arg0: i32, %arg1: i32) -> (i32, i32) {
    %c0_i32 = arith.constant 0 : i32
    %c0_i32_0 = arith.constant 0 : i32
    return %arg0, %c0_i32 : i32, i32
  }
  func.func @transform_2(%arg0: i32, %arg1: i32) -> (i32, i32, i32) {
    %c0_i32 = arith.constant 0 : i32
    %c0_i32_0 = arith.constant 0 : i32
    return %arg0, %arg1, %c0_i32 : i32, i32, i32
  }
  func.func @transform_3(%arg0: i32, %arg1: i32) -> (i32, i32) {
    %c0_i32 = arith.constant 0 : i32
    %c0_i32_0 = arith.constant 0 : i32
    %c0_i32_1 = arith.constant 0 : i32
    return %c0_i32, %c0_i32_0 : i32, i32
  }
  func.func @transform_4(%arg0: i32, %arg1: i32) -> (i32, i32) {
    %c0_i32 = arith.constant 0 : i32
    %c0_i32_0 = arith.constant 0 : i32
    %c0_i32_1 = arith.constant 0 : i32
    return %c0_i32, %c0_i32_0 : i32, i32
  }
  func.func @transform_5(%arg0: i32, %arg1: i32) -> (i32, i32) {
    %c0_i32 = arith.constant 0 : i32
    %c0_i32_0 = arith.constant 0 : i32
    return %arg1, %c0_i32 : i32, i32
  }
  func.func @transform_6(%arg0: i32, %arg1: i32) -> (i32, i32) {
    %c0_i32 = arith.constant 0 : i32
    %c0_i32_0 = arith.constant 0 : i32
    %c0_i32_1 = arith.constant 0 : i32
    return %c0_i32, %c0_i32_0 : i32, i32
  }
  func.func @transform_7(%arg0: i32, %arg1: i32) -> (i32, i32, i32) {
    %c0_i32 = arith.constant 0 : i32
    %c0_i32_0 = arith.constant 0 : i32
    return %arg0, %arg1, %c0_i32 : i32, i32, i32
  }
}

</mosaic_0001>

<bundles_post_ra>
// kernel: tpu_custom_call.1
= control target key start
LH: loop header
LB: loop body
LE: loop exit
PB: predicated region body
PF: predicated region fallthrough
CT: control target
= control target key end

     0   :  { %12 = vsyncpa [#allocation4], 0  ;;  %s5816_s0 = inlined_call_operand.vmem [shape: f32[128,16], index: 0, kind: input, shape index: {}]   ;;  %s5817_s1 = inlined_call_operand.vmem [shape: f32[128,16], index: 1, kind: input, shape index: {}]   ;;  %s5818_s2 = inlined_call_operand.vmem [shape: f32[8,32,32], index: 2, kind: input, shape index: {}]   ;;  %s5819_s3 = inlined_call_operand.hbm [shape: f32[128,128], index: 3, kind: input, shape index: {}]   ;;  %s5820_s4 = inlined_call_operand.vmem [shape: f32[16,16], index: 4, kind: input, shape index: {}]   ;;  %s5821_s5 = inlined_call_operand.vmem [shape: f32[32,16], index: 5, kind: input, shape index: {}]   ;;  %s5822_s6 = inlined_call_operand.vmem [shape: f32[16,32], index: 6, kind: input, shape index: {}]   ;;  %s5823_s7 = inlined_call_operand.hbm [shape: f32[8,32,32], index: 7, kind: output, shape index: {}]  }
   0x1   :  { %13 = vsyncpa [#allocation5], 0  ;;  %s4701_s24 = smov [#allocation3]   ;;  %s4653_s28 = scalar_lea.hbm %s5819_s3, 2048 }
   0x2   :  { %s25_s25 = sshll.u32 %s4701_s24, 4  ;;  %p4654_p0 = scmp.ne.s32.totalorder %s5819_s3, %s4653_s28  ;;  %s26_s25 = int_to_ptr.vmem [resolvable:$true] %s25_s25 }
   0x3   :  { %p4657_p1 = scmp.lt.u32.totalorder %s4653_s28, %s5819_s3 }
   0x5   :  { %p4659_p2 = pnand %p4657_p1, %p4654_p0 }
   0x7   :  { %4662 = shalt.err (!%p4659_p2)
}
   0x8   :  { %s4663_s10 = scalar_lea.vmem %s26_s25, 2048  ;;  %p4668_p4 = scmp.lt.s32.totalorder %s26_s25, %s26_s25 }
   0x9   :  { %p4664_p3 = scmp.ne.s32.totalorder %s26_s25, %s4663_s10  ;;  %p4669_p5 = scmp.lt.s32.totalorder %s4663_s10, %s4663_s10 }
   0xb   :  { %p4670_p6 = por %p4669_p5, %p4668_p4 }
   0xd   :  { %p4671_p7 = pnand %p4670_p6, %p4664_p3 }
   0xf   :  { %4674 = shalt.err (!%p4671_p7)
}
  0x10   :  { %s4702_s11 = smov 128   ;;  %s4703_s12 = smov 8  }
  0x11   :  { %31 = dma.hbm_to_vmem [thread:$0]  %s5819_s3, 2048, %s26_s25, [#allocation4], %s4702_s11, %s4702_s11, %s4703_s12  }
  0x12   :  { %4697 = dma.done.wait [#allocation4], 2048  }
  0x13   :  { %4698 = vsyncadd [#allocation4], 4294965248  ;;  %vm111_vm0 = vcmask 130048   ;;  %v109_v0 = vld [vmem:[%s5820_s4] sm:$0xff]  ;;  %v110_v1 = vld [vmem:[%s5820_s4 + $0x8] sm:$0xff]  ;;  %vm1752_vm1 = vcmask 261120  }
  0x14   :  { %v4769_v2 = vld [vmem:[%s5816_s0] sm:$0xff]  ;;  %v4417_v3 = vpack.c.bf16 %v110_v1, %v109_v0  ;;  %v4776_v4 = vld [vmem:[%s5816_s0 + $0x8] sm:$0xff]  ;;  %v4781_v5 = vld [vmem:[%s5816_s0 + $0x10] sm:$0xff]  ;;  %s4704_s29 = smov [#allocation6]  }
  0x15   :  { %3885 = vmatprep.mubr.msk.f32.mxu0 %vm111_vm0, %v4769_v2  ;;  %v4790_v6 = vld [vmem:[%s5816_s0 + $0x18] sm:$0xff]  ;;  %v4795_v7 = vld [vmem:[%s5816_s0 + $0x20] sm:$0xff]  ;;  %v4804_v8 = vld [vmem:[%s5816_s0 + $0x28] sm:$0xff]  ;;  %v93_v51 = vmul.f32 %v4769_v2, %v4769_v2  ;;  %v94_v52 = vmul.f32 %v4776_v4, %v4776_v4  ;;  %v95_v53 = vmul.f32 %v4781_v5, %v4781_v5  ;;  %s3357_s30 = sshll.u32 %s4704_s29, 4  ;;  %s3358_s30 = int_to_ptr.vmem [resolvable:$true] %s3357_s30 }
  0x16   :  { %4418 = vmatprep.subr.bf16.mxu0 %v4417_v3  ;;  %v4809_v9 = vld [vmem:[%s5816_s0 + $0x30] sm:$0xff]  ;;  %v4818_v10 = vld [vmem:[%s5816_s0 + $0x38] sm:$0xff]  ;;  %v4823_v11 = vld [vmem:[%s5816_s0 + $0x40] sm:$0xff]  ;;  %v96_v54 = vmul.f32 %v4790_v6, %v4790_v6  ;;  %v97_v55 = vmul.f32 %v4795_v7, %v4795_v7  ;;  %v98_v56 = vmul.f32 %v4804_v8, %v4804_v8  ;;  %s4675_s8 = scalar_lea.vmem %s3358_s30, 4096  ;;  %p4680_p9 = scmp.lt.s32.totalorder %s3358_s30, %s3358_s30 }
  0x17   :  { %4420 = vmatpush3.bf16.msra.mxu0 %v4417_v3  ;;  %v4832_v12 = vld [vmem:[%s5816_s0 + $0x48] sm:$0xff]  ;;  %v4837_v13 = vld [vmem:[%s5816_s0 + $0x50] sm:$0xff]  ;;  %v4846_v14 = vld [vmem:[%s5816_s0 + $0x58] sm:$0xff]  ;;  %v99_v57 = vmul.f32 %v4809_v9, %v4809_v9  ;;  %v100_v58 = vmul.f32 %v4818_v10, %v4818_v10  ;;  %v101_v59 = vmul.f32 %v4823_v11, %v4823_v11  ;;  %p4676_p8 = scmp.ne.s32.totalorder %s3358_s30, %s4675_s8  ;;  %p4681_p10 = scmp.lt.s32.totalorder %s4675_s8, %s4675_s8 }
  0x18   :  { %v4851_v15 = vld [vmem:[%s5816_s0 + $0x60] sm:$0xff]  ;;  %v4860_v16 = vld [vmem:[%s5816_s0 + $0x68] sm:$0xff]  ;;  %v4865_v17 = vld [vmem:[%s5816_s0 + $0x70] sm:$0xff]  ;;  %v102_v60 = vmul.f32 %v4832_v12, %v4832_v12  ;;  %v103_v61 = vmul.f32 %v4837_v13, %v4837_v13  ;;  %v104_v62 = vmul.f32 %v4846_v14, %v4846_v14 }
  0x19   :  { %v4874_v18 = vld [vmem:[%s5816_s0 + $0x78] sm:$0xff]  ;;  %v61_v19 = vld [vmem:[%s5817_s1] sm:$0xff]  ;;  %v62_v20 = vld [vmem:[%s5817_s1 + $0x8] sm:$0xff]  ;;  %v105_v63 = vmul.f32 %v4851_v15, %v4851_v15  ;;  %v106_v0 = vmul.f32 %v4860_v16, %v4860_v16  ;;  %v107_v1 = vmul.f32 %v4865_v17, %v4865_v17  ;;  %p4682_p11 = por %p4681_p10, %p4680_p9 }
  0x1a   :  { %3886 = vmatmul.mubr.msk.f32.vlgmr.msra.gmra.mrb[0].mxu0 %vm111_vm0, %v4776_v4  ;;  %v63_v21 = vld [vmem:[%s5817_s1 + $0x10] sm:$0xff]  ;;  %v64_v22 = vld [vmem:[%s5817_s1 + $0x18] sm:$0xff]  ;;  %v65_v23 = vld [vmem:[%s5817_s1 + $0x20] sm:$0xff]  ;;  %v77_v34 = vmul.f32 %v61_v19, %v4769_v2  ;;  %v78_v36 = vmul.f32 %v62_v20, %v4776_v4  ;;  %v108_v3 = vmul.f32 %v4874_v18, %v4874_v18 }
  0x1b   :  { %3888 = vmatprep.mubr.msk.f32.mxu0 %vm111_vm0, %v4781_v5  ;;  %v66_v24 = vld [vmem:[%s5817_s1 + $0x28] sm:$0xff]  ;;  %v67_v25 = vld [vmem:[%s5817_s1 + $0x30] sm:$0xff]  ;;  %v68_v26 = vld [vmem:[%s5817_s1 + $0x38] sm:$0xff]  ;;  %v79_v37 = vmul.f32 %v63_v21, %v4781_v5  ;;  %v80_v38 = vmul.f32 %v64_v22, %v4790_v6  ;;  %v81_v39 = vmul.f32 %v65_v23, %v4795_v7  ;;  %p4683_p12 = pnand %p4682_p11, %p4676_p8 }
  0x1c   :  { %v69_v27 = vld [vmem:[%s5817_s1 + $0x40] sm:$0xff]  ;;  %v70_v28 = vld [vmem:[%s5817_s1 + $0x48] sm:$0xff]  ;;  %v71_v29 = vld [vmem:[%s5817_s1 + $0x50] sm:$0xff]  ;;  %v82_v40 = vmul.f32 %v66_v24, %v4804_v8  ;;  %v83_v41 = vmul.f32 %v67_v25, %v4809_v9  ;;  %v84_v42 = vmul.f32 %v68_v26, %v4818_v10 }
  0x1d   :  { %v72_v30 = vld [vmem:[%s5817_s1 + $0x58] sm:$0xff]  ;;  %v73_v31 = vld [vmem:[%s5817_s1 + $0x60] sm:$0xff]  ;;  %v74_v32 = vld [vmem:[%s5817_s1 + $0x68] sm:$0xff]  ;;  %v85_v43 = vmul.f32 %v69_v27, %v4823_v11  ;;  %v86_v44 = vmul.f32 %v70_v28, %v4832_v12  ;;  %v87_v45 = vmul.f32 %v71_v29, %v4837_v13 }
  0x1e   :  { %3889 = vmatmul.mubr.msk.f32.gmra.mrb[2].mxu0 %vm111_vm0, %v4790_v6  ;;  %v75_v33 = vld [vmem:[%s5817_s1 + $0x70] sm:$0xff]  ;;  %v76_v35 = vld [vmem:[%s5817_s1 + $0x78] sm:$0xff]  ;;  %v88_v46 = vmul.f32 %v72_v30, %v4846_v14  ;;  %v89_v47 = vmul.f32 %v73_v31, %v4851_v15  ;;  %v90_v48 = vmul.f32 %v74_v32, %v4860_v16  ;;  %v5017_v2 = vld [vmem:[#allocation3] sm:$0xff] }
  0x1f   :  { %3891 = vmatprep.mubr.msk.f32.mxu0 %vm111_vm0, %v4795_v7  ;;  %v91_v49 = vmul.f32 %v75_v33, %v4865_v17  ;;  %v92_v50 = vmul.f32 %v76_v35, %v4874_v18  ;;  %4013 = vmatprep.mubr.f32.mxu1 %v5017_v2 }
  0x22   :  { %3892 = vmatmul.mubr.msk.f32.gmra.mrb[4].mxu0 %vm111_vm0, %v4804_v8 }
  0x23   :  { %3894 = vmatprep.mubr.msk.f32.mxu0 %vm111_vm0, %v4809_v9 }
  0x26   :  { %3895 = vmatmul.mubr.msk.f32.gmra.mrb[6].mxu0 %vm111_vm0, %v4818_v10 }
  0x27   :  { %3897 = vmatprep.mubr.msk.f32.mxu0 %vm111_vm0, %v4823_v11 }
  0x2a   :  { %3898 = vmatmul.mubr.msk.f32.gmra.mrb[8].mxu0 %vm111_vm0, %v4832_v12 }
  0x2b   :  { %3900 = vmatprep.mubr.msk.f32.mxu0 %vm111_vm0, %v4837_v13 }
  0x2e   :  { %3901 = vmatmul.mubr.msk.f32.gmra.mrb[10].mxu0 %vm111_vm0, %v4846_v14 }
  0x2f   :  { %3903 = vmatprep.mubr.msk.f32.mxu0 %vm111_vm0, %v4851_v15 }
  0x32   :  { %3904 = vmatmul.mubr.msk.f32.gmra.mrb[12].mxu0 %vm111_vm0, %v4860_v16 }
  0x33   :  { %3906 = vmatprep.mubr.msk.f32.mxu0 %vm111_vm0, %v4865_v17 }
  0x36   :  { %3907 = vmatmul.mubr.msk.f32.gmra.mrb[14].mxu0 %vm111_vm0, %v4874_v18 }
  0x37   :  { %3909 = vmatprep.mubr.msk.f32.mxu0 %vm111_vm0, %v61_v19 }
  0x3a   :  { %3910 = vmatmul.mubr.msk.f32.gmra.mrb[16].mxu0 %vm111_vm0, %v62_v20 }
  0x3b   :  { %3912 = vmatprep.mubr.msk.f32.mxu0 %vm111_vm0, %v63_v21 }
  0x3e   :  { %3913 = vmatmul.mubr.msk.f32.gmra.mrb[18].mxu0 %vm111_vm0, %v64_v22 }
  0x3f   :  { %3915 = vmatprep.mubr.msk.f32.mxu0 %vm111_vm0, %v65_v23 }
  0x42   :  { %3916 = vmatmul.mubr.msk.f32.gmra.mrb[20].mxu0 %vm111_vm0, %v66_v24 }
  0x43   :  { %3918 = vmatprep.mubr.msk.f32.mxu0 %vm111_vm0, %v67_v25 }
  0x46   :  { %3919 = vmatmul.mubr.msk.f32.gmra.mrb[22].mxu0 %vm111_vm0, %v68_v26 }
  0x47   :  { %3921 = vmatprep.mubr.msk.f32.mxu0 %vm111_vm0, %v69_v27 }
  0x4a   :  { %3922 = vmatmul.mubr.msk.f32.gmra.mrb[24].mxu0 %vm111_vm0, %v70_v28 }
  0x4b   :  { %3924 = vmatprep.mubr.msk.f32.mxu0 %vm111_vm0, %v71_v29 }
  0x4e   :  { %3925 = vmatmul.mubr.msk.f32.gmra.mrb[26].mxu0 %vm111_vm0, %v72_v30  ;;  %v5025_v30 = vld [vmem:[#allocation3 + $0x8] sm:$0xff] }
  0x4f   :  { %3927 = vmatprep.mubr.msk.f32.mxu0 %vm111_vm0, %v73_v31 }
  0x52   :  { %3928 = vmatmul.mubr.msk.f32.gmra.mrb[28].mxu0 %vm111_vm0, %v74_v32  ;;  %v5027_v32 = vld [vmem:[#allocation3 + $0x10] sm:$0xff] }
  0x53   :  { %3930 = vmatprep.mubr.msk.f32.mxu0 %vm111_vm0, %v75_v33 }
  0x56   :  { %3931 = vmatmul.mubr.msk.f32.gmra.mrb[30].mxu0 %vm111_vm0, %v76_v35  ;;  %v5031_v35 = vld [vmem:[#allocation3 + $0x18] sm:$0xff] }
  0x57   :  { %3933 = vmatprep.mubr.msk.f32.mxu0 %vm111_vm0, %v77_v34 }
  0x5a   :  { %3934 = vmatmul.mubr.msk.f32.gmra.mrb[32].mxu0 %vm111_vm0, %v78_v36 }
  0x5b   :  { %3936 = vmatprep.mubr.msk.f32.mxu0 %vm111_vm0, %v79_v37  ;;  %v5033_v37 = vld [vmem:[#allocation3 + $0x20] sm:$0xff] }
  0x5e   :  { %3937 = vmatmul.mubr.msk.f32.gmra.mrb[34].mxu0 %vm111_vm0, %v80_v38 }
  0x5f   :  { %3939 = vmatprep.mubr.msk.f32.mxu0 %vm111_vm0, %v81_v39 }
  0x62   :  { %3940 = vmatmul.mubr.msk.f32.gmra.mrb[36].mxu0 %vm111_vm0, %v82_v40  ;;  %v5037_v40 = vld [vmem:[#allocation3 + $0x28] sm:$0xff] }
  0x63   :  { %3942 = vmatprep.mubr.msk.f32.mxu0 %vm111_vm0, %v83_v41 }
  0x66   :  { %3943 = vmatmul.mubr.msk.f32.gmra.mrb[38].mxu0 %vm111_vm0, %v84_v42  ;;  %v5039_v42 = vld [vmem:[#allocation3 + $0x30] sm:$0xff] }
  0x67   :  { %3945 = vmatprep.mubr.msk.f32.mxu0 %vm111_vm0, %v85_v43 }
  0x6a   :  { %3946 = vmatmul.mubr.msk.f32.gmra.mrb[40].mxu0 %vm111_vm0, %v86_v44 }
  0x6b   :  { %3948 = vmatprep.mubr.msk.f32.mxu0 %vm111_vm0, %v87_v45  ;;  %v5043_v45 = vld [vmem:[#allocation3 + $0x38] sm:$0xff] }
  0x6e   :  { %3949 = vmatmul.mubr.msk.f32.gmra.mrb[42].mxu0 %vm111_vm0, %v88_v46 }
  0x6f   :  { %3951 = vmatprep.mubr.msk.f32.mxu0 %vm111_vm0, %v89_v47  ;;  %v5045_v47 = vld [vmem:[#allocation3 + $0x40] sm:$0xff] }
  0x72   :  { %3952 = vmatmul.mubr.msk.f32.gmra.mrb[44].mxu0 %vm111_vm0, %v90_v48 }
  0x73   :  { %3954 = vmatprep.mubr.msk.f32.mxu0 %vm111_vm0, %v91_v49 }
  0x76   :  { %3955 = vmatmul.mubr.msk.f32.gmra.mrb[46].mxu0 %vm111_vm0, %v92_v50  ;;  %v5049_v50 = vld [vmem:[#allocation3 + $0x48] sm:$0xff] }
  0x77   :  { %3957 = vmatprep.mubr.msk.f32.mxu0 %vm111_vm0, %v93_v51 }
  0x7a   :  { %3958 = vmatmul.mubr.msk.f32.gmra.mrb[48].mxu0 %vm111_vm0, %v94_v52  ;;  %v5051_v52 = vld [vmem:[#allocation3 + $0x50] sm:$0xff] }
  0x7b   :  { %3960 = vmatprep.mubr.msk.f32.mxu0 %vm111_vm0, %v95_v53 }
  0x7e   :  { %3961 = vmatmul.mubr.msk.f32.gmra.mrb[50].mxu0 %vm111_vm0, %v96_v54 }
  0x7f   :  { %3963 = vmatprep.mubr.msk.f32.mxu0 %vm111_vm0, %v97_v55  ;;  %v5055_v55 = vld [vmem:[#allocation3 + $0x58] sm:$0xff] }
  0x82   :  { %3964 = vmatmul.mubr.msk.f32.gmra.mrb[52].mxu0 %vm111_vm0, %v98_v56 }
  0x83   :  { %3966 = vmatprep.mubr.msk.f32.mxu0 %vm111_vm0, %v99_v57  ;;  %v5057_v57 = vld [vmem:[#allocation3 + $0x60] sm:$0xff] }
  0x86   :  { %3967 = vmatmul.mubr.msk.f32.gmra.mrb[54].mxu0 %vm111_vm0, %v100_v58 }
  0x87   :  { %3969 = vmatprep.mubr.msk.f32.mxu0 %vm111_vm0, %v101_v59 }
  0x8a   :  { %3970 = vmatmul.mubr.msk.f32.gmra.mrb[56].mxu0 %vm111_vm0, %v102_v60  ;;  %v5061_v60 = vld [vmem:[#allocation3 + $0x68] sm:$0xff] }
  0x8b   :  { %3972 = vmatprep.mubr.msk.f32.mxu0 %vm111_vm0, %v103_v61 }
  0x8e   :  { %3973 = vmatmul.mubr.msk.f32.gmra.mrb[58].mxu0 %vm111_vm0, %v104_v62  ;;  %v5063_v62 = vld [vmem:[#allocation3 + $0x70] sm:$0xff] }
  0x8f   :  { %3975 = vmatprep.mubr.msk.f32.mxu0 %vm111_vm0, %v105_v63 }
  0x92   :  { %3976 = vmatmul.mubr.msk.f32.gmra.mrb[60].mxu0 %vm111_vm0, %v106_v0 }
  0x93   :  { %3978 = vmatprep.mubr.msk.f32.mxu0 %vm111_vm0, %v107_v1  ;;  %v5067_v1 = vld [vmem:[#allocation3 + $0x78] sm:$0xff] }
  0x96   :  { %3979 = vmatmul.mubr.msk.f32.gmra.mrb[62].mxu0 %vm111_vm0, %v108_v3 }
  0xed   :  { %v3887_v4 = vpop.f32.mrb[0].mxu0 }
  0xee   :  { %v370_v5 = vpop.f32.mrb[1].mxu0 }
  0xef   :  { %v4421_v6 = vpack.c.bf16 %v3887_v4, %v370_v5 }
  0xf1   :  { %v3890_v7 = vpop.f32.mrb[2].mxu0  ;;  %4422 = vmatprep.subr.bf16.mxu1 %v4421_v6 }
  0xf2   :  { %v380_v8 = vpop.f32.mrb[3].mxu0  ;;  %4424 = vmatpush3.bf16.msra.mxu1 %v4421_v6 }
  0xf3   :  { %v4425_v9 = vpack.c.bf16 %v3890_v7, %v380_v8 }
  0xf5   :  { %v3893_v10 = vpop.f32.mrb[4].mxu0  ;;  %4426 = vmatprep.subr.bf16.mxu1 %v4425_v9 }
  0xf6   :  { %v390_v11 = vpop.f32.mrb[5].mxu0  ;;  %4428 = vmatpush3.bf16.msra.mxu1 %v4425_v9 }
  0xf7   :  { %v4429_v12 = vpack.c.bf16 %v3893_v10, %v390_v11 }
  0xf9   :  { %v3896_v13 = vpop.f32.mrb[6].mxu0  ;;  %4430 = vmatprep.subr.bf16.mxu1 %v4429_v12 }
  0xfa   :  { %v400_v14 = vpop.f32.mrb[7].mxu0  ;;  %4432 = vmatpush3.bf16.msra.mxu1 %v4429_v12 }
  0xfb   :  { %v4433_v15 = vpack.c.bf16 %v3896_v13, %v400_v14 }
  0xfd   :  { %v3899_v16 = vpop.f32.mrb[8].mxu0  ;;  %4434 = vmatprep.subr.bf16.mxu1 %v4433_v15 }
  0xfe   :  { %v410_v17 = vpop.f32.mrb[9].mxu0  ;;  %4436 = vmatpush3.bf16.msra.mxu1 %v4433_v15 }
  0xff   :  { %v4437_v18 = vpack.c.bf16 %v3899_v16, %v410_v17 }
 0x101   :  { %v3902_v19 = vpop.f32.mrb[10].mxu0  ;;  %4438 = vmatprep.subr.bf16.mxu1 %v4437_v18 }
 0x102   :  { %v420_v20 = vpop.f32.mrb[11].mxu0  ;;  %4440 = vmatpush3.bf16.msra.mxu1 %v4437_v18 }
 0x103   :  { %v4441_v21 = vpack.c.bf16 %v3902_v19, %v420_v20 }
 0x105   :  { %v3905_v22 = vpop.f32.mrb[12].mxu0  ;;  %4442 = vmatprep.subr.bf16.mxu1 %v4441_v21 }
 0x106   :  { %v430_v23 = vpop.f32.mrb[13].mxu0  ;;  %4444 = vmatpush3.bf16.msra.mxu1 %v4441_v21 }
 0x107   :  { %v4445_v24 = vpack.c.bf16 %v3905_v22, %v430_v23 }
 0x109   :  { %v3908_v25 = vpop.f32.mrb[14].mxu0  ;;  %4446 = vmatprep.subr.bf16.mxu1 %v4445_v24 }
 0x10a   :  { %v440_v26 = vpop.f32.mrb[15].mxu0  ;;  %4448 = vmatpush3.bf16.msra.mxu1 %v4445_v24 }
 0x10b   :  { %v4449_v27 = vpack.c.bf16 %v3908_v25, %v440_v26 }
 0x10d   :  { %v3911_v28 = vpop.f32.mrb[16].mxu0  ;;  %4450 = vmatprep.subr.bf16.mxu1 %v4449_v27 }
 0x10e   :  { %v450_v29 = vpop.f32.mrb[17].mxu0  ;;  %4452 = vmatpush3.bf16.msra.mxu1 %v4449_v27 }
 0x10f   :  { %v4453_v31 = vpack.c.bf16 %v3911_v28, %v450_v29 }
 0x111   :  { %v3914_v33 = vpop.f32.mrb[18].mxu0  ;;  %4014 = vmatmul.mubr.f32.vlgmr.msra.gmra.mrb[0].mxu1 %v5025_v30  ;;  %4454 = vmatprep.subr.bf16.mxu1 %v4453_v31 }
 0x112   :  { %v460_v34 = vpop.f32.mrb[19].mxu0  ;;  %4456 = vmatpush3.bf16.msra.mxu1 %v4453_v31  ;;  %4016 = vmatprep.mubr.f32.mxu1 %v5027_v32 }
 0x113   :  { %v4457_v36 = vpack.c.bf16 %v3914_v33, %v460_v34 }
 0x115   :  { %v3917_v38 = vpop.f32.mrb[20].mxu0  ;;  %4017 = vmatmul.mubr.f32.gmra.mrb[2].mxu1 %v5031_v35  ;;  %4458 = vmatprep.subr.bf16.mxu1 %v4457_v36 }
 0x116   :  { %v470_v39 = vpop.f32.mrb[21].mxu0  ;;  %4460 = vmatpush3.bf16.msra.mxu1 %v4457_v36  ;;  %4019 = vmatprep.mubr.f32.mxu1 %v5033_v37 }
 0x117   :  { %v4461_v41 = vpack.c.bf16 %v3917_v38, %v470_v39 }
 0x119   :  { %v3920_v43 = vpop.f32.mrb[22].mxu0  ;;  %4020 = vmatmul.mubr.f32.gmra.mrb[4].mxu1 %v5037_v40  ;;  %4462 = vmatprep.subr.bf16.mxu1 %v4461_v41 }
 0x11a   :  { %v480_v44 = vpop.f32.mrb[23].mxu0  ;;  %4464 = vmatpush3.bf16.msra.mxu1 %v4461_v41  ;;  %4022 = vmatprep.mubr.f32.mxu1 %v5039_v42 }
 0x11b   :  { %v4465_v46 = vpack.c.bf16 %v3920_v43, %v480_v44 }
 0x11d   :  { %v3923_v48 = vpop.f32.mrb[24].mxu0  ;;  %4023 = vmatmul.mubr.f32.gmra.mrb[6].mxu1 %v5043_v45  ;;  %4466 = vmatprep.subr.bf16.mxu1 %v4465_v46 }
 0x11e   :  { %v490_v49 = vpop.f32.mrb[25].mxu0  ;;  %4468 = vmatpush3.bf16.msra.mxu1 %v4465_v46  ;;  %4025 = vmatprep.mubr.f32.mxu1 %v5045_v47 }
 0x11f   :  { %v4469_v51 = vpack.c.bf16 %v3923_v48, %v490_v49 }
 0x121   :  { %v3926_v53 = vpop.f32.mrb[26].mxu0  ;;  %4026 = vmatmul.mubr.f32.gmra.mrb[8].mxu1 %v5049_v50  ;;  %4470 = vmatprep.subr.bf16.mxu1 %v4469_v51 }
 0x122   :  { %v500_v54 = vpop.f32.mrb[27].mxu0  ;;  %4472 = vmatpush3.bf16.msra.mxu1 %v4469_v51  ;;  %4028 = vmatprep.mubr.f32.mxu1 %v5051_v52 }
 0x123   :  { %v4473_v56 = vpack.c.bf16 %v3926_v53, %v500_v54 }
 0x125   :  { %v3929_v58 = vpop.f32.mrb[28].mxu0  ;;  %4029 = vmatmul.mubr.f32.gmra.mrb[10].mxu1 %v5055_v55  ;;  %4474 = vmatprep.subr.bf16.mxu1 %v4473_v56 }
 0x126   :  { %v510_v59 = vpop.f32.mrb[29].mxu0  ;;  %4476 = vmatpush3.bf16.msra.mxu1 %v4473_v56  ;;  %4031 = vmatprep.mubr.f32.mxu1 %v5057_v57 }
 0x127   :  { %v4477_v61 = vpack.c.bf16 %v3929_v58, %v510_v59 }
 0x129   :  { %v3932_v63 = vpop.f32.mrb[30].mxu0  ;;  %4032 = vmatmul.mubr.f32.gmra.mrb[12].mxu1 %v5061_v60  ;;  %4478 = vmatprep.subr.bf16.mxu1 %v4477_v61 }
 0x12a   :  { %v520_v0 = vpop.f32.mrb[31].mxu0  ;;  %4480 = vmatpush3.bf16.msra.mxu1 %v4477_v61  ;;  %4034 = vmatprep.mubr.f32.mxu1 %v5063_v62 }
 0x12b   :  { %v4481_v3 = vpack.c.bf16 %v3932_v63, %v520_v0 }
 0x12d   :  { %v3935_v4 = vpop.f32.mrb[32].mxu0  ;;  %4035 = vmatmul.mubr.f32.gmra.mrb[14].mxu1 %v5067_v1  ;;  %4482 = vmatprep.subr.bf16.mxu1 %v4481_v3 }
 0x12e   :  { %v530_v5 = vpop.f32.mrb[33].mxu0  ;;  %4484 = vmatpush3.bf16.msra.mxu1 %v4481_v3  ;;  %4069 = vmatprep.mubr.f32.mxu1 %v5017_v2 }
 0x12f   :  { %v4485_v6 = vpack.c.bf16 %v3935_v4, %v530_v5 }
 0x131   :  { %v3938_v7 = vpop.f32.mrb[34].mxu0  ;;  %4070 = vmatmul.mubr.f32.vlgmr.msra.gmra.mrb[16].mxu1 %v5025_v30  ;;  %4486 = vmatprep.subr.bf16.mxu1 %v4485_v6 }
 0x132   :  { %v540_v8 = vpop.f32.mrb[35].mxu0  ;;  %4488 = vmatpush3.bf16.msra.mxu1 %v4485_v6  ;;  %4072 = vmatprep.mubr.f32.mxu1 %v5027_v32 }
 0x133   :  { %v4489_v9 = vpack.c.bf16 %v3938_v7, %v540_v8 }
 0x135   :  { %v3941_v10 = vpop.f32.mrb[36].mxu0  ;;  %4073 = vmatmul.mubr.f32.gmra.mrb[18].mxu1 %v5031_v35  ;;  %4490 = vmatprep.subr.bf16.mxu1 %v4489_v9 }
 0x136   :  { %v550_v11 = vpop.f32.mrb[37].mxu0  ;;  %4492 = vmatpush3.bf16.msra.mxu1 %v4489_v9  ;;  %4075 = vmatprep.mubr.f32.mxu1 %v5033_v37 }
 0x137   :  { %v4493_v12 = vpack.c.bf16 %v3941_v10, %v550_v11 }
 0x139   :  { %v3944_v13 = vpop.f32.mrb[38].mxu0  ;;  %4076 = vmatmul.mubr.f32.gmra.mrb[20].mxu1 %v5037_v40  ;;  %4494 = vmatprep.subr.bf16.mxu1 %v4493_v12 }
 0x13a   :  { %v560_v14 = vpop.f32.mrb[39].mxu0  ;;  %4496 = vmatpush3.bf16.msra.mxu1 %v4493_v12  ;;  %4078 = vmatprep.mubr.f32.mxu1 %v5039_v42 }
 0x13b   :  { %v4497_v15 = vpack.c.bf16 %v3944_v13, %v560_v14 }
 0x13d   :  { %v3947_v16 = vpop.f32.mrb[40].mxu0  ;;  %4079 = vmatmul.mubr.f32.gmra.mrb[22].mxu1 %v5043_v45  ;;  %4498 = vmatprep.subr.bf16.mxu1 %v4497_v15 }
 0x13e   :  { %v570_v17 = vpop.f32.mrb[41].mxu0  ;;  %4500 = vmatpush3.bf16.msra.mxu1 %v4497_v15  ;;  %4081 = vmatprep.mubr.f32.mxu1 %v5045_v47 }
 0x13f   :  { %v4501_v18 = vpack.c.bf16 %v3947_v16, %v570_v17 }
 0x141   :  { %v3950_v19 = vpop.f32.mrb[42].mxu0  ;;  %4082 = vmatmul.mubr.f32.gmra.mrb[24].mxu1 %v5049_v50  ;;  %4502 = vmatprep.subr.bf16.mxu1 %v4501_v18 }
 0x142   :  { %v580_v20 = vpop.f32.mrb[43].mxu0  ;;  %4504 = vmatpush3.bf16.msra.mxu1 %v4501_v18  ;;  %4084 = vmatprep.mubr.f32.mxu1 %v5051_v52 }
 0x143   :  { %v4505_v21 = vpack.c.bf16 %v3950_v19, %v580_v20 }
 0x145   :  { %v3953_v22 = vpop.f32.mrb[44].mxu0  ;;  %4085 = vmatmul.mubr.f32.gmra.mrb[26].mxu1 %v5055_v55  ;;  %4506 = vmatprep.subr.bf16.mxu1 %v4505_v21 }
 0x146   :  { %v590_v23 = vpop.f32.mrb[45].mxu0  ;;  %4508 = vmatpush3.bf16.msra.mxu1 %v4505_v21  ;;  %4087 = vmatprep.mubr.f32.mxu1 %v5057_v57 }
 0x147   :  { %v4509_v24 = vpack.c.bf16 %v3953_v22, %v590_v23 }
 0x149   :  { %v3956_v25 = vpop.f32.mrb[46].mxu0  ;;  %4088 = vmatmul.mubr.f32.gmra.mrb[28].mxu1 %v5061_v60  ;;  %4510 = vmatprep.subr.bf16.mxu1 %v4509_v24 }
 0x14a   :  { %v600_v26 = vpop.f32.mrb[47].mxu0  ;;  %4512 = vmatpush3.bf16.msra.mxu1 %v4509_v24  ;;  %4090 = vmatprep.mubr.f32.mxu1 %v5063_v62 }
 0x14b   :  { %v4513_v27 = vpack.c.bf16 %v3956_v25, %v600_v26 }
 0x14d   :  { %v3959_v28 = vpop.f32.mrb[48].mxu0  ;;  %4091 = vmatmul.mubr.f32.gmra.mrb[30].mxu1 %v5067_v1  ;;  %4514 = vmatprep.subr.bf16.mxu1 %v4513_v27 }
 0x14e   :  { %v610_v29 = vpop.f32.mrb[49].mxu0  ;;  %4516 = vmatpush3.bf16.msra.mxu1 %v4513_v27  ;;  %4125 = vmatprep.mubr.f32.mxu1 %v5017_v2 }
 0x14f   :  { %v4517_v31 = vpack.c.bf16 %v3959_v28, %v610_v29 }
 0x151   :  { %v3962_v33 = vpop.f32.mrb[50].mxu0  ;;  %4126 = vmatmul.mubr.f32.vlgmr.msra.gmra.mrb[32].mxu1 %v5025_v30  ;;  %4518 = vmatprep.subr.bf16.mxu1 %v4517_v31 }
 0x152   :  { %v620_v34 = vpop.f32.mrb[51].mxu0  ;;  %4520 = vmatpush3.bf16.msra.mxu1 %v4517_v31  ;;  %4128 = vmatprep.mubr.f32.mxu1 %v5027_v32 }
 0x153   :  { %v4521_v36 = vpack.c.bf16 %v3962_v33, %v620_v34 }
 0x155   :  { %v3965_v38 = vpop.f32.mrb[52].mxu0  ;;  %4129 = vmatmul.mubr.f32.gmra.mrb[34].mxu1 %v5031_v35  ;;  %4522 = vmatprep.subr.bf16.mxu1 %v4521_v36 }
 0x156   :  { %v630_v39 = vpop.f32.mrb[53].mxu0  ;;  %4524 = vmatpush3.bf16.msra.mxu1 %v4521_v36  ;;  %4131 = vmatprep.mubr.f32.mxu1 %v5033_v37 }
 0x157   :  { %v4525_v41 = vpack.c.bf16 %v3965_v38, %v630_v39 }
 0x159   :  { %v3968_v43 = vpop.f32.mrb[54].mxu0  ;;  %4132 = vmatmul.mubr.f32.gmra.mrb[36].mxu1 %v5037_v40  ;;  %4526 = vmatprep.subr.bf16.mxu1 %v4525_v41 }
 0x15a   :  { %v640_v44 = vpop.f32.mrb[55].mxu0  ;;  %4528 = vmatpush3.bf16.msra.mxu1 %v4525_v41  ;;  %4134 = vmatprep.mubr.f32.mxu1 %v5039_v42 }
 0x15b   :  { %v4529_v46 = vpack.c.bf16 %v3968_v43, %v640_v44 }
 0x15d   :  { %v3971_v48 = vpop.f32.mrb[56].mxu0  ;;  %4135 = vmatmul.mubr.f32.gmra.mrb[38].mxu1 %v5043_v45  ;;  %4530 = vmatprep.subr.bf16.mxu1 %v4529_v46 }
 0x15e   :  { %v650_v49 = vpop.f32.mrb[57].mxu0  ;;  %4532 = vmatpush3.bf16.msra.mxu1 %v4529_v46  ;;  %4137 = vmatprep.mubr.f32.mxu1 %v5045_v47 }
 0x15f   :  { %v4533_v51 = vpack.c.bf16 %v3971_v48, %v650_v49 }
 0x161   :  { %v3974_v53 = vpop.f32.mrb[58].mxu0  ;;  %4138 = vmatmul.mubr.f32.gmra.mrb[40].mxu1 %v5049_v50  ;;  %4534 = vmatprep.subr.bf16.mxu1 %v4533_v51 }
 0x162   :  { %v660_v54 = vpop.f32.mrb[59].mxu0  ;;  %4536 = vmatpush3.bf16.msra.mxu1 %v4533_v51  ;;  %4140 = vmatprep.mubr.f32.mxu1 %v5051_v52 }
 0x163   :  { %v4537_v56 = vpack.c.bf16 %v3974_v53, %v660_v54 }
 0x165   :  { %v3977_v58 = vpop.f32.mrb[60].mxu0  ;;  %4141 = vmatmul.mubr.f32.gmra.mrb[42].mxu1 %v5055_v55  ;;  %4538 = vmatprep.subr.bf16.mxu1 %v4537_v56 }
 0x166   :  { %v670_v59 = vpop.f32.mrb[61].mxu0  ;;  %4540 = vmatpush3.bf16.msra.mxu1 %v4537_v56  ;;  %4143 = vmatprep.mubr.f32.mxu1 %v5057_v57 }
 0x167   :  { %v4541_v61 = vpack.c.bf16 %v3977_v58, %v670_v59 }
 0x169   :  { %v3980_v63 = vpop.f32.mrb[62].mxu0  ;;  %4144 = vmatmul.mubr.f32.gmra.mrb[44].mxu1 %v5061_v60  ;;  %4542 = vmatprep.subr.bf16.mxu1 %v4541_v61 }
 0x16a   :  { %v680_v0 = vpop.f32.mrb[63].mxu0  ;;  %4544 = vmatpush3.bf16.msra.mxu1 %v4541_v61  ;;  %4146 = vmatprep.mubr.f32.mxu1 %v5063_v62 }
 0x16b   :  { %v4545_v3 = vpack.c.bf16 %v3980_v63, %v680_v0 }
 0x16d   :  { %4147 = vmatmul.mubr.f32.gmra.mrb[46].mxu1 %v5067_v1  ;;  %4546 = vmatprep.subr.bf16.mxu1 %v4545_v3 }
 0x16e   :  { %4548 = vmatpush3.bf16.msra.mxu1 %v4545_v3  ;;  %4181 = vmatprep.mubr.f32.mxu1 %v5017_v2  ;;  %v1429_v2 = vld [vmem:[%s5822_s6] sm:$0xff] }
 0x171   :  { %4182 = vmatmul.mubr.f32.vlgmr.msra.gmra.mrb[48].mxu1 %v5025_v30  ;;  %v1430_v30 = vld [vmem:[%s5822_s6 + $0x8] sm:$0xff] }
 0x172   :  { %4184 = vmatprep.mubr.f32.mxu1 %v5027_v32  ;;  %v4549_v32 = vpack.c.bf16 %v1430_v30, %v1429_v2 }
 0x174   :  { %4550 = vmatprep.subr.bf16.mxu0 %v4549_v32 }
 0x175   :  { %4185 = vmatmul.mubr.f32.gmra.mrb[50].mxu1 %v5031_v35  ;;  %4552 = vmatpush3.bf16.msra.mxu0 %v4549_v32 }
 0x176   :  { %4187 = vmatprep.mubr.f32.mxu1 %v5033_v37 }
 0x179   :  { %4188 = vmatmul.mubr.f32.gmra.mrb[52].mxu1 %v5037_v40 }
 0x17a   :  { %4190 = vmatprep.mubr.f32.mxu1 %v5039_v42 }
 0x17d   :  { %4191 = vmatmul.mubr.f32.gmra.mrb[54].mxu1 %v5043_v45 }
 0x17e   :  { %4193 = vmatprep.mubr.f32.mxu1 %v5045_v47 }
 0x181   :  { %4194 = vmatmul.mubr.f32.gmra.mrb[56].mxu1 %v5049_v50 }
 0x182   :  { %4196 = vmatprep.mubr.f32.mxu1 %v5051_v52 }
 0x185   :  { %4197 = vmatmul.mubr.f32.gmra.mrb[58].mxu1 %v5055_v55 }
 0x186   :  { %4199 = vmatprep.mubr.f32.mxu1 %v5057_v57 }
 0x189   :  { %4200 = vmatmul.mubr.f32.gmra.mrb[60].mxu1 %v5061_v60 }
 0x18a   :  { %4202 = vmatprep.mubr.f32.mxu1 %v5063_v62 }
 0x18d   :  { %4203 = vmatmul.mubr.f32.gmra.mrb[62].mxu1 %v5067_v1 }
 0x1e4   :  { %v5124_v35 = vpop.f32.mrb[0].mxu1 }
 0x1e5   :  { %v5126_v37 = vpop.f32.mrb[1].mxu1 }
 0x1e6   :  { %v1317_v61 = vmul.f32 %v5126_v37, %v5126_v37 }
 0x1e8   :  { %v5128_v40 = vpop.f32.mrb[2].mxu1 }
 0x1e9   :  { %v5130_v42 = vpop.f32.mrb[3].mxu1 }
 0x1ec   :  { %v5132_v45 = vpop.f32.mrb[4].mxu1 }
 0x1ed   :  { %v5134_v47 = vpop.f32.mrb[5].mxu1 }
 0x1f0   :  { %v5136_v50 = vpop.f32.mrb[6].mxu1 }
 0x1f1   :  { %v5138_v52 = vpop.f32.mrb[7].mxu1 }
 0x1f4   :  { %v5140_v55 = vpop.f32.mrb[8].mxu1 }
 0x1f5   :  { %v5142_v57 = vpop.f32.mrb[9].mxu1 }
 0x1f8   :  { %v5144_v60 = vpop.f32.mrb[10].mxu1 }
 0x1f9   :  { %v5146_v62 = vpop.f32.mrb[11].mxu1 }
 0x1fc   :  { %v5148_v1 = vpop.f32.mrb[12].mxu1 }
 0x1fd   :  { %v5150_v4 = vpop.f32.mrb[13].mxu1 }
 0x200   :  { %v5152_v5 = vpop.f32.mrb[14].mxu1 }
 0x201   :  { %v5154_v6 = vpop.f32.mrb[15].mxu1 }
 0x204   :  { %v5156_v7 = vpop.f32.mrb[16].mxu1 }
 0x205   :  { %v5160_v8 = vmul.f32 %v5156_v7, %v5124_v35  ;;  %v5162_v9 = vpop.f32.mrb[17].mxu1 }
 0x206   :  { %v5166_v10 = vmul.f32 %v5162_v9, %v5126_v37 }
 0x208   :  { %v5168_v11 = vpop.f32.mrb[18].mxu1 }
 0x209   :  { %v5172_v12 = vmul.f32 %v5168_v11, %v5128_v40  ;;  %v5174_v13 = vpop.f32.mrb[19].mxu1 }
 0x20a   :  { %v5178_v14 = vmul.f32 %v5174_v13, %v5130_v42 }
 0x20c   :  { %v5180_v15 = vpop.f32.mrb[20].mxu1 }
 0x20d   :  { %v5184_v16 = vmul.f32 %v5180_v15, %v5132_v45  ;;  %v5186_v17 = vpop.f32.mrb[21].mxu1 }
 0x20e   :  { %v5190_v18 = vmul.f32 %v5186_v17, %v5134_v47 }
 0x210   :  { %v5192_v19 = vpop.f32.mrb[22].mxu1 }
 0x211   :  { %v5196_v20 = vmul.f32 %v5192_v19, %v5136_v50  ;;  %v5198_v21 = vpop.f32.mrb[23].mxu1 }
 0x212   :  { %v5202_v22 = vmul.f32 %v5198_v21, %v5138_v52 }
 0x214   :  { %v5204_v23 = vpop.f32.mrb[24].mxu1 }
 0x215   :  { %v5208_v24 = vmul.f32 %v5204_v23, %v5140_v55  ;;  %v5210_v25 = vpop.f32.mrb[25].mxu1 }
 0x216   :  { %5841 = vst [vmem:[#allocation9_spill] sm:$0xff] %v5210_v25  ;;  %v5214_v26 = vmul.f32 %v5210_v25, %v5142_v57 }
 0x218   :  { %v5216_v27 = vpop.f32.mrb[26].mxu1 }
 0x219   :  { %5842 = vst [vmem:[#allocation10_spill] sm:$0xff] %v5216_v27  ;;  %v5220_v28 = vmul.f32 %v5216_v27, %v5144_v60  ;;  %v5222_v29 = vpop.f32.mrb[27].mxu1 }
 0x21a   :  { %5843 = vst [vmem:[#allocation11_spill] sm:$0xff] %v5222_v29  ;;  %v5226_v31 = vmul.f32 %v5222_v29, %v5146_v62  ;;  %v1318_v29 = vmul.f32 %v5124_v35, %v5124_v35 }
 0x21c   :  { %5844 = vst [vmem:[#allocation12_spill] sm:$0xff] %v5226_v31  ;;  %v5228_v33 = vpop.f32.mrb[28].mxu1 }
 0x21d   :  { %5845 = vst [vmem:[#allocation13_spill] sm:$0xff] %v5228_v33  ;;  %v5232_v34 = vmul.f32 %v5228_v33, %v5148_v1  ;;  %v5234_v36 = vpop.f32.mrb[29].mxu1 }
 0x21e   :  { %5847 = vst [vmem:[#allocation15_spill] sm:$0xff] %v5234_v36  ;;  %v5238_v38 = vmul.f32 %v5234_v36, %v5150_v4 }
 0x21f   :  { %5846 = vst [vmem:[#allocation14_spill] sm:$0xff] %v5232_v34 }
 0x220   :  { %5848 = vst [vmem:[#allocation16_spill] sm:$0xff] %v5238_v38  ;;  %v5240_v39 = vpop.f32.mrb[30].mxu1 }
 0x221   :  { %5849 = vst [vmem:[#allocation17_spill] sm:$0xff] %v5240_v39  ;;  %v5244_v41 = vmul.f32 %v5240_v39, %v5152_v5  ;;  %v5246_v43 = vpop.f32.mrb[31].mxu1 }
 0x222   :  { %5851 = vst [vmem:[#allocation19_spill] sm:$0xff] %v5246_v43  ;;  %v5250_v44 = vmul.f32 %v5246_v43, %v5154_v6 }
 0x223   :  { %5850 = vst [vmem:[#allocation18_spill] sm:$0xff] %v5244_v41 }
 0x224   :  { %5852 = vst [vmem:[#allocation20_spill] sm:$0xff] %v5250_v44  ;;  %v5252_v46 = vpop.f32.mrb[32].mxu1 }
 0x225   :  { %v5256_v49 = vpop.f32.mrb[33].mxu1 }
 0x228   :  { %v5260_v53 = vpop.f32.mrb[34].mxu1 }
 0x229   :  { %v5264_v56 = vpop.f32.mrb[35].mxu1 }
 0x22c   :  { %v5268_v59 = vpop.f32.mrb[36].mxu1 }
 0x22d   :  { %v5272_v63 = vpop.f32.mrb[37].mxu1 }
 0x230   :  { %v5276_v3 = vpop.f32.mrb[38].mxu1 }
 0x231   :  { %v5280_v30 = vpop.f32.mrb[39].mxu1 }
 0x234   :  { %v5284_v58 = vpop.f32.mrb[40].mxu1 }
 0x235   :  { %v5288_v54 = vpop.f32.mrb[41].mxu1 }
 0x238   :  { %v5292_v51 = vpop.f32.mrb[42].mxu1 }
 0x239   :  { %v5296_v48 = vpop.f32.mrb[43].mxu1 }
 0x23a   :  { %5853 = vst [vmem:[#allocation21_spill] sm:$0xff] %v5296_v48 }
 0x23c   :  { %v5300_v43 = vpop.f32.mrb[44].mxu1 }
 0x23d   :  { %5854 = vst [vmem:[#allocation22_spill] sm:$0xff] %v5300_v43  ;;  %v5304_v39 = vpop.f32.mrb[45].mxu1 }
 0x23e   :  { %5855 = vst [vmem:[#allocation23_spill] sm:$0xff] %v5304_v39  ;;  %v1320_v39 = vmul.f32 %v5128_v40, %v5128_v40 }
 0x240   :  { %v5308_v36 = vpop.f32.mrb[46].mxu1 }
 0x241   :  { %5856 = vst [vmem:[#allocation24_spill] sm:$0xff] %v5308_v36  ;;  %v5312_v33 = vpop.f32.mrb[47].mxu1  ;;  %v1319_v36 = vmul.f32 %v5130_v42, %v5130_v42 }
 0x242   :  { %5857 = vst [vmem:[#allocation25_spill] sm:$0xff] %v5312_v33 }
 0x244   :  { %v4183_v27 = vpop.f32.mrb[48].mxu1 }
 0x245   :  { %v1334_v34 = vsub.f32 %v4183_v27, %v1318_v29  ;;  %v1206_v43 = vpop.f32.mrb[49].mxu1  ;;  %v1322_v27 = vmul.f32 %v5132_v45, %v5132_v45 }
 0x246   :  { %v1333_v0 = vsub.f32 %v1206_v43, %v1317_v61 }
 0x247   :  { %v1350_v38 = vadd.f32 1e-08, %v1334_v34  ;;  %v1321_v34 = vmul.f32 %v5134_v47, %v5134_v47 }
 0x248   :  { %v1349_v2 = vadd.f32 1e-08, %v1333_v0  ;;  %v4186_v41 = vpop.f32.mrb[50].mxu1 }
 0x249   :  { %4621 = vrcp.f32 %v1350_v38  ;;  %v1336_v32 = vsub.f32 %v4186_v41, %v1320_v39  ;;  %v1216_v44 = vpop.f32.mrb[51].mxu1  ;;  %v1324_v38 = vmul.f32 %v5136_v50, %v5136_v50  ;;  %v1323_v41 = vmul.f32 %v5138_v52, %v5138_v52 }
 0x24a   :  { %4623 = vrcp.f32 %v1349_v2  ;;  %v1335_v33 = vsub.f32 %v1216_v44, %v1319_v36 }
 0x24b   :  { %v1352_v25 = vadd.f32 1e-08, %v1336_v32 }
 0x24c   :  { %v1351_v29 = vadd.f32 1e-08, %v1335_v33  ;;  %v4189_v43 = vpop.f32.mrb[52].mxu1 }
 0x24d   :  { %4625 = vrcp.f32 %v1352_v25  ;;  %v1338_v61 = vsub.f32 %v4189_v43, %v1322_v27  ;;  %v1226_v0 = vpop.f32.mrb[53].mxu1  ;;  %v1326_v27 = vmul.f32 %v5140_v55, %v5140_v55  ;;  %v5858_v43 = vsub.f32 %v5252_v46, %v5160_v8 }
 0x24e   :  { %4627 = vrcp.f32 %v1351_v29  ;;  %v1337_v31 = vsub.f32 %v1226_v0, %v1321_v34  ;;  %v1325_v0 = vmul.f32 %v5142_v57, %v5142_v57  ;;  %v1328_v46 = vmul.f32 %v5144_v60, %v5144_v60 }
 0x24f   :  { %v1354_v48 = vadd.f32 1e-08, %v1338_v61 }
 0x250   :  { %v1353_v39 = vadd.f32 1e-08, %v1337_v31  ;;  %v4192_v36 = vpop.f32.mrb[54].mxu1 }
 0x251   :  { %4629 = vrcp.f32 %v1354_v48  ;;  %v1340_v33 = vsub.f32 %v4192_v36, %v1324_v38  ;;  %v1236_v44 = vpop.f32.mrb[55].mxu1 }
 0x252   :  { %4631 = vrcp.f32 %v1353_v39  ;;  %v1339_v2 = vsub.f32 %v1236_v44, %v1323_v41  ;;  %v5859_v39 = vsub.f32 %v5256_v49, %v5166_v10  ;;  %v1327_v10 = vmul.f32 %v5146_v62, %v5146_v62 }
 0x253   :  { %v4622_v32 = vpop.eup %4621  ;;  %v1356_v25 = vadd.f32 1e-08, %v1340_v33 }
 0x254   :  { %v4624_v29 = vpop.eup %4623  ;;  %v1382_v34 = vmul.f32 %v4622_v32, %v5858_v43  ;;  %v1355_v31 = vadd.f32 1e-08, %v1339_v2  ;;  %v4195_v61 = vpop.f32.mrb[56].mxu1 }
 0x255   :  { %4633 = vrcp.f32 %v1356_v25  ;;  %v1342_v48 = vsub.f32 %v4195_v61, %v1326_v27  ;;  %v1246_v38 = vpop.f32.mrb[57].mxu1  ;;  %v1381_v36 = vmul.f32 %v4624_v29, %v5859_v39 }
 0x256   :  { %4635 = vrcp.f32 %v1355_v31  ;;  %v1341_v41 = vsub.f32 %v1246_v38, %v1325_v0  ;;  %v5343_v33 = vmul.f32 %v5124_v35, %v1382_v34  ;;  %v5860_v35 = vsub.f32 %v5260_v53, %v5172_v12 }
 0x257   :  { %v4626_v44 = vpop.eup %4625  ;;  %v1358_v8 = vadd.f32 1e-08, %v1342_v48  ;;  %4209 = vmatprep.mubr.msk.f32.mxu0 %vm111_vm0, %v1381_v36  ;;  %v5349_v2 = vmul.f32 %v1381_v36, %v5126_v37  ;;  %v5861_v37 = vsub.f32 %v5264_v56, %v5178_v14  ;;  %v1330_v38 = vmul.f32 %v5148_v1, %v5148_v1 }
 0x258   :  { %v4628_v32 = vpop.eup %4627  ;;  %v1357_v25 = vadd.f32 1e-08, %v1341_v41  ;;  %v4198_v27 = vpop.f32.mrb[58].mxu1  ;;  %4210 = vmatmul.mubr.msk.f32.vlgmr.msra.gmra.mrb[64].mxu0 %vm111_vm0, %v1382_v34  ;;  %v1384_v49 = vmul.f32 %v4626_v44, %v5860_v35  ;;  %v1414_v29 = vsub.f32 %v5156_v7, %v5343_v33  ;;  %v1329_v41 = vmul.f32 %v5150_v4, %v5150_v4 }
 0x259   :  { %4637 = vrcp.f32 %v1358_v8  ;;  %v1344_v43 = vsub.f32 %v4198_v27, %v1328_v46  ;;  %v1256_v31 = vpop.f32.mrb[59].mxu1  ;;  %v1383_v61 = vmul.f32 %v4628_v32, %v5861_v37  ;;  %v1413_v34 = vsub.f32 %v5162_v9, %v5349_v2 }
 0x25a   :  { %4639 = vrcp.f32 %v1357_v25  ;;  %v1343_v0 = vsub.f32 %v1256_v31, %v1327_v10  ;;  %v5365_v48 = vmul.f32 %v5128_v40, %v1384_v49  ;;  %v5862_v40 = vsub.f32 %v5268_v59, %v5184_v16 }
 0x25b   :  { %v4630_v12 = vpop.eup %4629  ;;  %v1360_v53 = vadd.f32 1e-08, %v1344_v43  ;;  %4212 = vmatprep.mubr.msk.f32.mxu0 %vm111_vm0, %v1383_v61  ;;  %v5371_v39 = vmul.f32 %v1383_v61, %v5130_v42  ;;  %v5863_v42 = vsub.f32 %v5272_v63, %v5190_v18  ;;  %v1331_v37 = vmul.f32 %v5154_v6, %v5154_v6 }
 0x25c   :  { %v4632_v14 = vpop.eup %4631  ;;  %v1359_v56 = vadd.f32 1e-08, %v1343_v0  ;;  %v4201_v36 = vpop.f32.mrb[60].mxu1  ;;  %4213 = vmatmul.mubr.msk.f32.gmra.mrb[66].mxu0 %vm111_vm0, %v1384_v49  ;;  %v1386_v44 = vmul.f32 %v4630_v12, %v5862_v40  ;;  %v1416_v8 = vsub.f32 %v5168_v11, %v5365_v48  ;;  %v1332_v49 = vmul.f32 %v5152_v5, %v5152_v5 }
 0x25d   :  { %4641 = vrcp.f32 %v1360_v53  ;;  %v1346_v46 = vsub.f32 %v4201_v36, %v1330_v38  ;;  %v1266_v32 = vpop.f32.mrb[61].mxu1  ;;  %v1385_v25 = vmul.f32 %v4632_v14, %v5863_v42  ;;  %v1415_v27 = vsub.f32 %v5174_v13, %v5371_v39  ;;  %v5512_v39 = vld [vmem:[%s5821_s5 + $0x8] sm:$0xff] }
 0x25e   :  { %4643 = vrcp.f32 %v1359_v56  ;;  %v1345_v10 = vsub.f32 %v1266_v32, %v1329_v41  ;;  %v5387_v35 = vmul.f32 %v5132_v45, %v1386_v44  ;;  %v5864_v45 = vsub.f32 %v5276_v3, %v5196_v20 }
 0x25f   :  { %v4634_v16 = vpop.eup %4633  ;;  %v1362_v59 = vadd.f32 1e-08, %v1346_v46  ;;  %4215 = vmatprep.mubr.msk.f32.mxu0 %vm111_vm0, %v1385_v25  ;;  %v5393_v43 = vmul.f32 %v1385_v25, %v5134_v47  ;;  %v5865_v47 = vsub.f32 %v5280_v30, %v5202_v22  ;;  %v5866_v22 = vsub.f32 %v5284_v58, %v5208_v24  ;;  %v5870_v58 = vld [vmem:[#allocation12_spill] sm:$0xff] }
 0x260   :  { %v4636_v18 = vpop.eup %4635  ;;  %v1361_v63 = vadd.f32 1e-08, %v1345_v10  ;;  %v4204_v31 = vpop.f32.mrb[62].mxu1  ;;  %4216 = vmatmul.mubr.msk.f32.gmra.mrb[68].mxu0 %vm111_vm0, %v1386_v44  ;;  %v1388_v61 = vmul.f32 %v4634_v16, %v5864_v45  ;;  %v1418_v0 = vsub.f32 %v5180_v15, %v5387_v35  ;;  %v5877_v45 = vld [vmem:[#allocation23_spill] sm:$0xff] }
 0x261   :  { %4645 = vrcp.f32 %v1362_v59  ;;  %v1348_v12 = vsub.f32 %v4204_v31, %v1332_v49  ;;  %v1276_v53 = vpop.f32.mrb[63].mxu1  ;;  %v1387_v38 = vmul.f32 %v4636_v18, %v5865_v47  ;;  %v1417_v14 = vsub.f32 %v5186_v17, %v5393_v43  ;;  %v5872_v59 = vld [vmem:[#allocation9_spill] sm:$0xff]  ;;  %v5876_v31 = vld [vmem:[#allocation10_spill] sm:$0xff]  ;;  %v5880_v47 = vld [vmem:[#allocation11_spill] sm:$0xff] }
 0x262   :  { %4647 = vrcp.f32 %v1361_v63  ;;  %v1347_v56 = vsub.f32 %v1276_v53, %v1331_v37  ;;  %v1404_v36 = vmul.f32 %v5136_v50, %v1388_v61  ;;  %v5867_v50 = vsub.f32 %v5288_v54, %v5214_v26  ;;  %v5869_v54 = vld [vmem:[#allocation21_spill] sm:$0xff] }
 0x263   :  { %v4638_v41 = vpop.eup %4637  ;;  %v1364_v20 = vadd.f32 1e-08, %v1348_v12  ;;  %4218 = vmatprep.mubr.msk.f32.mxu0 %vm111_vm0, %v1387_v38  ;;  %v1403_v3 = vmul.f32 %v1387_v38, %v5138_v52 }
 0x264   :  { %v4640_v40 = vpop.eup %4639  ;;  %v1363_v44 = vadd.f32 1e-08, %v1347_v56  ;;  %4219 = vmatmul.mubr.msk.f32.gmra.mrb[70].mxu0 %vm111_vm0, %v1388_v61  ;;  %v1390_v30 = vmul.f32 %v4638_v41, %v5866_v22  ;;  %v1420_v17 = vsub.f32 %v5192_v19, %v1404_v36  ;;  %v5868_v19 = vsub.f32 %v5292_v51, %v5220_v28  ;;  %v5873_v28 = vld [vmem:[#allocation22_spill] sm:$0xff]  ;;  %v5878_v61 = vld [vmem:[#allocation16_spill] sm:$0xff] }
 0x265   :  { %4649 = vrcp.f32 %v1364_v20  ;;  %v1389_v46 = vmul.f32 %v4640_v40, %v5867_v50  ;;  %v1419_v32 = vsub.f32 %v5198_v21, %v1403_v3  ;;  %v5871_v21 = vsub.f32 %v5869_v54, %v5870_v58  ;;  %v5874_v51 = vld [vmem:[#allocation14_spill] sm:$0xff]  ;;  %v5881_v41 = vld [vmem:[#allocation24_spill] sm:$0xff] }
 0x266   :  { %4651 = vrcp.f32 %v1363_v44  ;;  %v1406_v52 = vmul.f32 %v5140_v55, %v1390_v30  ;;  %v5875_v63 = vsub.f32 %v5873_v28, %v5874_v51  ;;  %v5879_v12 = vsub.f32 %v5877_v45, %v5878_v61  ;;  %v5882_v20 = vld [vmem:[#allocation18_spill] sm:$0xff]  ;;  %v5884_v44 = vld [vmem:[#allocation13_spill] sm:$0xff]  ;;  %v5886_v50 = vld [vmem:[#allocation20_spill] sm:$0xff] }
 0x267   :  { %v4642_v42 = vpop.eup %4641  ;;  %4221 = vmatprep.mubr.msk.f32.mxu0 %vm111_vm0, %v1389_v46  ;;  %v1405_v25 = vmul.f32 %v1389_v46, %v5142_v57  ;;  %v5883_v3 = vsub.f32 %v5881_v41, %v5882_v20 }
 0x268   :  { %v4644_v10 = vpop.eup %4643  ;;  %4222 = vmatmul.mubr.msk.f32.gmra.mrb[72].mxu0 %vm111_vm0, %v1390_v30  ;;  %v1392_v24 = vmul.f32 %v4642_v42, %v5868_v19  ;;  %v1422_v26 = vsub.f32 %v5204_v23, %v1406_v52  ;;  %v5885_v30 = vld [vmem:[#allocation25_spill] sm:$0xff]  ;;  %v5888_v42 = vld [vmem:[#allocation15_spill] sm:$0xff] }
 0x269   :  { %v1391_v16 = vmul.f32 %v4644_v10, %v5871_v21  ;;  %v1421_v55 = vsub.f32 %v5872_v59, %v1405_v25  ;;  %v5887_v46 = vsub.f32 %v5885_v30, %v5886_v50  ;;  %v5889_v10 = vld [vmem:[#allocation17_spill] sm:$0xff] }
 0x26a   :  { %v1408_v49 = vmul.f32 %v5144_v60, %v1392_v24 }
 0x26b   :  { %v4646_v43 = vpop.eup %4645  ;;  %4224 = vmatprep.mubr.msk.f32.mxu0 %vm111_vm0, %v1391_v16  ;;  %v1407_v57 = vmul.f32 %v1391_v16, %v5146_v62 }
 0x26c   :  { %v4648_v18 = vpop.eup %4647  ;;  %4225 = vmatmul.mubr.msk.f32.gmra.mrb[74].mxu0 %vm111_vm0, %v1392_v24  ;;  %v1394_v23 = vmul.f32 %v4646_v43, %v5875_v63  ;;  %v1424_v37 = vsub.f32 %v5876_v31, %v1408_v49  ;;  %v5890_v24 = vld [vmem:[#allocation19_spill] sm:$0xff] }
 0x26d   :  { %v1393_v53 = vmul.f32 %v4648_v18, %v5879_v12  ;;  %v1423_v60 = vsub.f32 %v5880_v47, %v1407_v57 }
 0x26e   :  { %v1410_v38 = vmul.f32 %v5148_v1, %v1394_v23 }
 0x26f   :  { %v4650_v56 = vpop.eup %4649  ;;  %4227 = vmatprep.mubr.msk.f32.mxu0 %vm111_vm0, %v1393_v53  ;;  %v1409_v62 = vmul.f32 %v1393_v53, %v5150_v4 }
 0x270   :  { %v4652_v36 = vpop.eup %4651  ;;  %4228 = vmatmul.mubr.msk.f32.gmra.mrb[76].mxu0 %vm111_vm0, %v1394_v23  ;;  %v1396_v40 = vmul.f32 %v4650_v56, %v5883_v3  ;;  %v1426_v22 = vsub.f32 %v5884_v44, %v1410_v38 }
 0x271   :  { %v1395_v52 = vmul.f32 %v4652_v36, %v5887_v46  ;;  %v1425_v1 = vsub.f32 %v5888_v42, %v1409_v62 }
 0x272   :  { %v1412_v25 = vmul.f32 %v5152_v5, %v1396_v40  ;;  %v5496_v5 = vld [vmem:[%s5821_s5] sm:$0xff] }
 0x273   :  { %4230 = vmatprep.mubr.msk.f32.mxu0 %vm111_vm0, %v1395_v52  ;;  %v1411_v4 = vmul.f32 %v1395_v52, %v5154_v6  ;;  %4261 = vmatprep.mubr.msk.f32.mxu1 %vm111_vm0, %v5496_v5 }
 0x274   :  { %4231 = vmatmul.mubr.msk.f32.gmra.mrb[78].mxu0 %vm111_vm0, %v1396_v40  ;;  %v1428_v19 = vsub.f32 %v5889_v10, %v1412_v25 }
 0x275   :  { %4233 = vmatprep.mubr.msk.f32.mxu0 %vm111_vm0, %v1413_v34  ;;  %v1427_v54 = vsub.f32 %v5890_v24, %v1411_v4 }
 0x278   :  { %4234 = vmatmul.mubr.msk.f32.gmra.mrb[80].mxu0 %vm111_vm0, %v1414_v29 }
 0x279   :  { %4236 = vmatprep.mubr.msk.f32.mxu0 %vm111_vm0, %v1415_v27 }
 0x27c   :  { %4237 = vmatmul.mubr.msk.f32.gmra.mrb[82].mxu0 %vm111_vm0, %v1416_v8  ;;  %v5518_v8 = vld [vmem:[%s5821_s5 + $0x10] sm:$0xff] }
 0x27d   :  { %4239 = vmatprep.mubr.msk.f32.mxu0 %vm111_vm0, %v1417_v14 }
 0x280   :  { %4240 = vmatmul.mubr.msk.f32.gmra.mrb[84].mxu0 %vm111_vm0, %v1418_v0  ;;  %v5528_v0 = vld [vmem:[%s5821_s5 + $0x18] sm:$0xff] }
 0x281   :  { %4242 = vmatprep.mubr.msk.f32.mxu0 %vm111_vm0, %v1419_v32 }
 0x284   :  { %4243 = vmatmul.mubr.msk.f32.gmra.mrb[86].mxu0 %vm111_vm0, %v1420_v17 }
 0x285   :  { %4245 = vmatprep.mubr.msk.f32.mxu0 %vm111_vm0, %v1421_v55 }
 0x288   :  { %4246 = vmatmul.mubr.msk.f32.gmra.mrb[88].mxu0 %vm111_vm0, %v1422_v26 }
 0x289   :  { %4248 = vmatprep.mubr.msk.f32.mxu0 %vm111_vm0, %v1423_v60 }
 0x28c   :  { %4249 = vmatmul.mubr.msk.f32.gmra.mrb[90].mxu0 %vm111_vm0, %v1424_v37 }
 0x28d   :  { %4251 = vmatprep.mubr.msk.f32.mxu0 %vm111_vm0, %v1425_v1 }
 0x290   :  { %4252 = vmatmul.mubr.msk.f32.gmra.mrb[92].mxu0 %vm111_vm0, %v1426_v22 }
 0x291   :  { %4254 = vmatprep.mubr.msk.f32.mxu0 %vm111_vm0, %v1427_v54 }
 0x294   :  { %4255 = vmatmul.mubr.msk.f32.gmra.mrb[94].mxu0 %vm111_vm0, %v1428_v19 }
 0x295   :  { %4311 = vmatprep.mubr.msk.f32.mxu0 %vm111_vm0, %v5496_v5 }
 0x32b   :  { %v4211_v6 = vpop.f32.mrb[64].mxu0 }
 0x32c   :  { %1754 = vst.msk [vmem:[#allocation2 + $0x8] sm:$0xff] %vm1752_vm1, %v4211_v6  ;;  %v1593_v7 = vpop.f32.mrb[65].mxu0 }
 0x32d   :  { %1753 = vst.msk [vmem:[#allocation2] sm:$0xff] %vm1752_vm1, %v1593_v7 }
 0x32f   :  { %v4214_v9 = vpop.f32.mrb[66].mxu0 }
 0x330   :  { %1756 = vst.msk [vmem:[#allocation2 + $0x18] sm:$0xff] %vm1752_vm1, %v4214_v9  ;;  %v1603_v11 = vpop.f32.mrb[67].mxu0 }
 0x331   :  { %1755 = vst.msk [vmem:[#allocation2 + $0x10] sm:$0xff] %vm1752_vm1, %v1603_v11 }
 0x333   :  { %v4217_v13 = vpop.f32.mrb[68].mxu0  ;;  %v1790_v15 = vld [vmem:[#allocation2 + $0x8] sm:$0xff] }
 0x334   :  { %1758 = vst.msk [vmem:[#allocation2 + $0x28] sm:$0xff] %vm1752_vm1, %v4217_v13  ;;  %v1613_v33 = vpop.f32.mrb[69].mxu0  ;;  %v1789_v2 = vld [vmem:[#allocation2] sm:$0xff] }
 0x335   :  { %1757 = vst.msk [vmem:[#allocation2 + $0x20] sm:$0xff] %vm1752_vm1, %v1613_v33  ;;  %v4553_v29 = vpack.c.bf16 %v1790_v15, %v1789_v2 }
 0x337   :  { %v4220_v34 = vpop.f32.mrb[70].mxu0  ;;  %4554 = vmatprep.subr.bf16.mxu1 %v4553_v29  ;;  %v1996_v63 = vld [vmem:[#allocation2 + $0x18] sm:$0xff] }
 0x338   :  { %1760 = vst.msk [vmem:[#allocation2 + $0x38] sm:$0xff] %vm1752_vm1, %v4220_v34  ;;  %v1623_v48 = vpop.f32.mrb[71].mxu0  ;;  %4556 = vmatpush3.bf16.msra.mxu1 %v4553_v29  ;;  %v1995_v51 = vld [vmem:[#allocation2 + $0x10] sm:$0xff] }
 0x339   :  { %1759 = vst.msk [vmem:[#allocation2 + $0x30] sm:$0xff] %vm1752_vm1, %v1623_v48  ;;  %v4561_v37 = vpack.c.bf16 %v1996_v63, %v1995_v51 }
 0x33b   :  { %v4223_v27 = vpop.f32.mrb[72].mxu0  ;;  %4262 = vmatmul.mubr.msk.f32.vlgmr.msra.gmra.mrb[64].mxu1 %vm111_vm0, %v5512_v39  ;;  %v2190_v44 = vld [vmem:[#allocation2 + $0x28] sm:$0xff] }
 0x33c   :  { %1762 = vst.msk [vmem:[#allocation2 + $0x48] sm:$0xff] %vm1752_vm1, %v4223_v27  ;;  %v1633_v35 = vpop.f32.mrb[73].mxu0  ;;  %4264 = vmatprep.mubr.msk.f32.mxu1 %vm111_vm0, %v5518_v8  ;;  %v2189_v40 = vld [vmem:[#allocation2 + $0x20] sm:$0xff] }
 0x33d   :  { %1761 = vst.msk [vmem:[#allocation2 + $0x40] sm:$0xff] %vm1752_vm1, %v1633_v35  ;;  %v4569_v50 = vpack.c.bf16 %v2190_v44, %v2189_v40 }
 0x33f   :  { %v4226_v14 = vpop.f32.mrb[74].mxu0  ;;  %4265 = vmatmul.mubr.msk.f32.gmra.mrb[66].mxu1 %vm111_vm0, %v5528_v0  ;;  %v2384_v24 = vld [vmem:[#allocation2 + $0x38] sm:$0xff] }
 0x340   :  { %1764 = vst.msk [vmem:[#allocation2 + $0x58] sm:$0xff] %vm1752_vm1, %v4226_v14  ;;  %v1643_v17 = vpop.f32.mrb[75].mxu0  ;;  %4271 = vmatprep.mubr.msk.f32.mxu1 %vm111_vm0, %v5496_v5  ;;  %v2383_v19 = vld [vmem:[#allocation2 + $0x30] sm:$0xff] }
 0x341   :  { %1763 = vst.msk [vmem:[#allocation2 + $0x50] sm:$0xff] %vm1752_vm1, %v1643_v17  ;;  %v4577_v7 = vpack.c.bf16 %v2384_v24, %v2383_v19 }
 0x343   :  { %v4229_v32 = vpop.f32.mrb[76].mxu0  ;;  %v2578_v9 = vld [vmem:[#allocation2 + $0x48] sm:$0xff] }
 0x344   :  { %1766 = vst.msk [vmem:[#allocation2 + $0x68] sm:$0xff] %vm1752_vm1, %v4229_v32  ;;  %v1653_v26 = vpop.f32.mrb[77].mxu0  ;;  %v2577_v11 = vld [vmem:[#allocation2 + $0x40] sm:$0xff] }
 0x345   :  { %1765 = vst.msk [vmem:[#allocation2 + $0x60] sm:$0xff] %vm1752_vm1, %v1653_v26  ;;  %v4585_v33 = vpack.c.bf16 %v2578_v9, %v2577_v11 }
 0x347   :  { %v4232_v58 = vpop.f32.mrb[78].mxu0  ;;  %v2772_v29 = vld [vmem:[#allocation2 + $0x58] sm:$0xff] }
 0x348   :  { %1768 = vst.msk [vmem:[#allocation2 + $0x78] sm:$0xff] %vm1752_vm1, %v4232_v58  ;;  %v1663_v21 = vpop.f32.mrb[79].mxu0  ;;  %v2771_v34 = vld [vmem:[#allocation2 + $0x50] sm:$0xff] }
 0x349   :  { %1767 = vst.msk [vmem:[#allocation2 + $0x70] sm:$0xff] %vm1752_vm1, %v1663_v21  ;;  %v4593_v35 = vpack.c.bf16 %v2772_v29, %v2771_v34 }
 0x34b   :  { %v4235_v16 = vpop.f32.mrb[80].mxu0  ;;  %v2966_v32 = vld [vmem:[#allocation2 + $0x68] sm:$0xff] }
 0x34c   :  { %1770 = vst.msk [vmem:[#allocation2 + $0x88] sm:$0xff] %vm1752_vm1, %v4235_v16  ;;  %v1673_v59 = vpop.f32.mrb[81].mxu0  ;;  %v2965_v17 = vld [vmem:[#allocation2 + $0x60] sm:$0xff] }
 0x34d   :  { %1769 = vst.msk [vmem:[#allocation2 + $0x80] sm:$0xff] %vm1752_vm1, %v1673_v59  ;;  %v4601_v26 = vpack.c.bf16 %v2966_v32, %v2965_v17  ;;  %v3495_v17 = vld [vmem:[%s5818_s2 + $0x50] sm:$0xff] }
 0x34f   :  { %v4238_v55 = vpop.f32.mrb[82].mxu0  ;;  %v3160_v21 = vld [vmem:[#allocation2 + $0x78] sm:$0xff] }
 0x350   :  { %1772 = vst.msk [vmem:[#allocation2 + $0x98] sm:$0xff] %vm1752_vm1, %v4238_v55  ;;  %v1683_v49 = vpop.f32.mrb[83].mxu0  ;;  %v3159_v58 = vld [vmem:[#allocation2 + $0x70] sm:$0xff] }
 0x351   :  { %1771 = vst.msk [vmem:[#allocation2 + $0x90] sm:$0xff] %vm1752_vm1, %v1683_v49  ;;  %v4609_v16 = vpack.c.bf16 %v3160_v21, %v3159_v58 }
 0x353   :  { %v4241_v43 = vpop.f32.mrb[84].mxu0  ;;  %v1891_v57 = vld [vmem:[#allocation2 + $0x88] sm:$0xff] }
 0x354   :  { %1774 = vst.msk [vmem:[#allocation2 + $0xa8] sm:$0xff] %vm1752_vm1, %v4241_v43  ;;  %v1693_v18 = vpop.f32.mrb[85].mxu0  ;;  %v1890_v28 = vld [vmem:[#allocation2 + $0x80] sm:$0xff] }
 0x355   :  { %1773 = vst.msk [vmem:[#allocation2 + $0xa0] sm:$0xff] %vm1752_vm1, %v1693_v18  ;;  %v4557_v23 = vpack.c.bf16 %v1891_v57, %v1890_v28  ;;  %v1978_v57 = vld [vmem:[%s5818_s2 + $0x8] sm:$0xff] }
 0x357   :  { %v4244_v31 = vpop.f32.mrb[86].mxu0  ;;  %4558 = vmatprep.subr.bf16.mxu1 %v4557_v23  ;;  %v2084_v12 = vld [vmem:[#allocation2 + $0x98] sm:$0xff] }
 0x358   :  { %1776 = vst.msk [vmem:[#allocation2 + $0xb8] sm:$0xff] %vm1752_vm1, %v4244_v31  ;;  %v1703_v45 = vpop.f32.mrb[87].mxu0  ;;  %4560 = vmatpush3.bf16.msra.mxu1 %v4557_v23  ;;  %v2083_v61 = vld [vmem:[#allocation2 + $0x90] sm:$0xff] }
 0x359   :  { %1775 = vst.msk [vmem:[#allocation2 + $0xb0] sm:$0xff] %vm1752_vm1, %v1703_v45  ;;  %4562 = vmatprep.subr.bf16.mxu1 %v4561_v37  ;;  %v4565_v47 = vpack.c.bf16 %v2084_v12, %v2083_v61 }
 0x35b   :  { %v4247_v53 = vpop.f32.mrb[88].mxu0  ;;  %4272 = vmatmul.mubr.msk.f32.vlgmr.msra.gmra.mrb[68].mxu1 %vm111_vm0, %v5512_v39  ;;  %v2278_v60 = vld [vmem:[#allocation2 + $0xa8] sm:$0xff] }
 0x35c   :  { %1778 = vst.msk [vmem:[#allocation2 + $0xc8] sm:$0xff] %vm1752_vm1, %v4247_v53  ;;  %v1713_v38 = vpop.f32.mrb[89].mxu0  ;;  %4564 = vmatpush3.bf16.msra.mxu1 %v4561_v37  ;;  %4274 = vmatprep.mubr.msk.f32.mxu1 %vm111_vm0, %v5518_v8  ;;  %v2277_v56 = vld [vmem:[#allocation2 + $0xa0] sm:$0xff] }
 0x35d   :  { %1777 = vst.msk [vmem:[#allocation2 + $0xc0] sm:$0xff] %vm1752_vm1, %v1713_v38  ;;  %4566 = vmatprep.subr.bf16.mxu1 %v4565_v47  ;;  %v4573_v62 = vpack.c.bf16 %v2278_v60, %v2277_v56 }
 0x35f   :  { %v4250_v36 = vpop.f32.mrb[90].mxu0  ;;  %4275 = vmatmul.mubr.msk.f32.gmra.mrb[70].mxu1 %vm111_vm0, %v5528_v0  ;;  %4574 = vmatprep.subr.bf16.mxu0 %v4573_v62  ;;  %v2472_v41 = vld [vmem:[#allocation2 + $0xb8] sm:$0xff] }
 0x360   :  { %1780 = vst.msk [vmem:[#allocation2 + $0xd8] sm:$0xff] %vm1752_vm1, %v4250_v36  ;;  %v1723_v20 = vpop.f32.mrb[91].mxu0  ;;  %4576 = vmatpush3.bf16.msra.mxu0 %v4573_v62  ;;  %4281 = vmatprep.mubr.msk.f32.mxu1 %vm111_vm0, %v5496_v5  ;;  %v2471_v3 = vld [vmem:[#allocation2 + $0xb0] sm:$0xff]  ;;  %v3482_v62 = vld [vmem:[%s5818_s2 + $0x28] sm:$0xff] }
 0x361   :  { %1779 = vst.msk [vmem:[#allocation2 + $0xd0] sm:$0xff] %vm1752_vm1, %v1723_v20  ;;  %v4581_v22 = vpack.c.bf16 %v2472_v41, %v2471_v3  ;;  %v3481_v20 = vld [vmem:[%s5818_s2 + $0x20] sm:$0xff] }
 0x363   :  { %v4253_v30 = vpop.f32.mrb[92].mxu0  ;;  %4282 = vmatmul.mubr.msk.f32.vlgmr.msra.gmra.mrb[72].mxu1 %vm111_vm0, %v5512_v39  ;;  %4312 = vmatmul.mubr.msk.f32.vlgmr.msra.gmra.mrb[96].mxu0 %vm111_vm0, %v5512_v39  ;;  %v2666_v46 = vld [vmem:[#allocation2 + $0xc8] sm:$0xff] }
 0x364   :  { %1782 = vst.msk [vmem:[#allocation2 + $0xe8] sm:$0xff] %vm1752_vm1, %v4253_v30  ;;  %4568 = vmatpush3.bf16.msra.mxu1 %v4565_v47  ;;  %4582 = vmatprep.subr.bf16.mxu0 %v4581_v22  ;;  %v1733_v52 = vpop.f32.mrb[93].mxu0  ;;  %v2665_v42 = vld [vmem:[#allocation2 + $0xc0] sm:$0xff]  ;;  %v3484_v30 = vld [vmem:[%s5818_s2 + $0x38] sm:$0xff] }
 0x365   :  { %1781 = vst.msk [vmem:[#allocation2 + $0xe0] sm:$0xff] %vm1752_vm1, %v1733_v52  ;;  %4570 = vmatprep.subr.bf16.mxu1 %v4569_v50  ;;  %4584 = vmatpush3.bf16.msra.mxu0 %v4581_v22  ;;  %v4589_v1 = vpack.c.bf16 %v2666_v46, %v2665_v42  ;;  %v3483_v52 = vld [vmem:[%s5818_s2 + $0x30] sm:$0xff] }
 0x366   :  { %4284 = vmatprep.mubr.msk.f32.mxu1 %vm111_vm0, %v5518_v8  ;;  %4314 = vmatprep.mubr.msk.f32.mxu0 %vm111_vm0, %v5518_v8 }
 0x367   :  { %v4256_v25 = vpop.f32.mrb[94].mxu0  ;;  %4285 = vmatmul.mubr.msk.f32.gmra.mrb[74].mxu1 %vm111_vm0, %v5528_v0  ;;  %4315 = vmatmul.mubr.msk.f32.gmra.mrb[98].mxu0 %vm111_vm0, %v5528_v0  ;;  %v2860_v4 = vld [vmem:[#allocation2 + $0xd8] sm:$0xff] }
 0x368   :  { %1784 = vst.msk [vmem:[#allocation2 + $0xf8] sm:$0xff] %vm1752_vm1, %v4256_v25  ;;  %4590 = vmatprep.subr.bf16.mxu0 %v4589_v1  ;;  %v1743_v10 = vpop.f32.mrb[95].mxu0  ;;  %4291 = vmatprep.mubr.msk.f32.mxu1 %vm111_vm0, %v5496_v5  ;;  %v2859_v54 = vld [vmem:[#allocation2 + $0xd0] sm:$0xff] }
 0x369   :  { %1783 = vst.msk [vmem:[#allocation2 + $0xf0] sm:$0xff] %vm1752_vm1, %v1743_v10  ;;  %4331 = vmatprep.mubr.msk.f32.mxu0 %vm111_vm0, %v5496_v5  ;;  %v4597_v6 = vpack.c.bf16 %v2860_v4, %v2859_v54 }
 0x36b   :  { %4292 = vmatmul.mubr.msk.f32.vlgmr.msra.gmra.mrb[76].mxu1 %vm111_vm0, %v5512_v39  ;;  %4332 = vmatmul.mubr.msk.f32.vlgmr.msra.gmra.mrb[100].mxu0 %vm111_vm0, %v5512_v39  ;;  %v3054_v15 = vld [vmem:[#allocation2 + $0xe8] sm:$0xff] }
 0x36c   :  { %4572 = vmatpush3.bf16.msra.mxu1 %v4569_v50  ;;  %4592 = vmatpush3.bf16.msra.mxu0 %v4589_v1  ;;  %v3053_v13 = vld [vmem:[#allocation2 + $0xe0] sm:$0xff] }
 0x36d   :  { %4578 = vmatprep.subr.bf16.mxu1 %v4577_v7  ;;  %4598 = vmatprep.subr.bf16.mxu0 %v4597_v6  ;;  %v4605_v2 = vpack.c.bf16 %v3054_v15, %v3053_v13  ;;  %v3494_v13 = vld [vmem:[%s5818_s2 + $0x48] sm:$0xff]  ;;  %v3493_v15 = vld [vmem:[%s5818_s2 + $0x40] sm:$0xff] }
 0x36e   :  { %4294 = vmatprep.mubr.msk.f32.mxu1 %vm111_vm0, %v5518_v8  ;;  %4334 = vmatprep.mubr.msk.f32.mxu0 %vm111_vm0, %v5518_v8 }
 0x36f   :  { %4295 = vmatmul.mubr.msk.f32.gmra.mrb[78].mxu1 %vm111_vm0, %v5528_v0  ;;  %4335 = vmatmul.mubr.msk.f32.gmra.mrb[102].mxu0 %vm111_vm0, %v5528_v0  ;;  %v3248_v27 = vld [vmem:[#allocation2 + $0xf8] sm:$0xff] }
 0x370   :  { %4301 = vmatprep.mubr.msk.f32.mxu1 %vm111_vm0, %v5496_v5  ;;  %4351 = vmatprep.mubr.msk.f32.mxu0 %vm111_vm0, %v5496_v5  ;;  %v3247_v48 = vld [vmem:[#allocation2 + $0xf0] sm:$0xff] }
 0x371   :  { %v4613_v14 = vpack.c.bf16 %v3248_v27, %v3247_v48 }
 0x373   :  { %4302 = vmatmul.mubr.msk.f32.vlgmr.msra.gmra.mrb[80].mxu1 %vm111_vm0, %v5512_v39  ;;  %4352 = vmatmul.mubr.msk.f32.vlgmr.msra.gmra.mrb[104].mxu0 %vm111_vm0, %v5512_v39 }
 0x374   :  { %4580 = vmatpush3.bf16.msra.mxu1 %v4577_v7  ;;  %4600 = vmatpush3.bf16.msra.mxu0 %v4597_v6 }
 0x375   :  { %4586 = vmatprep.subr.bf16.mxu1 %v4585_v33  ;;  %4606 = vmatprep.subr.bf16.mxu0 %v4605_v2 }
 0x376   :  { %4304 = vmatprep.mubr.msk.f32.mxu1 %vm111_vm0, %v5518_v8  ;;  %4354 = vmatprep.mubr.msk.f32.mxu0 %vm111_vm0, %v5518_v8 }
 0x377   :  { %4305 = vmatmul.mubr.msk.f32.gmra.mrb[82].mxu1 %vm111_vm0, %v5528_v0  ;;  %4355 = vmatmul.mubr.msk.f32.gmra.mrb[106].mxu0 %vm111_vm0, %v5528_v0 }
 0x378   :  { %4321 = vmatprep.mubr.msk.f32.mxu1 %vm111_vm0, %v5496_v5  ;;  %4371 = vmatprep.mubr.msk.f32.mxu0 %vm111_vm0, %v5496_v5 }
 0x37b   :  { %4322 = vmatmul.mubr.msk.f32.vlgmr.msra.gmra.mrb[84].mxu1 %vm111_vm0, %v5512_v39  ;;  %4372 = vmatmul.mubr.msk.f32.vlgmr.msra.gmra.mrb[108].mxu0 %vm111_vm0, %v5512_v39 }
 0x37c   :  { %4588 = vmatpush3.bf16.msra.mxu1 %v4585_v33  ;;  %4608 = vmatpush3.bf16.msra.mxu0 %v4605_v2 }
 0x37d   :  { %4594 = vmatprep.subr.bf16.mxu1 %v4593_v35  ;;  %4614 = vmatprep.subr.bf16.mxu0 %v4613_v14 }
 0x37e   :  { %4324 = vmatprep.mubr.msk.f32.mxu1 %vm111_vm0, %v5518_v8  ;;  %4374 = vmatprep.mubr.msk.f32.mxu0 %vm111_vm0, %v5518_v8 }
 0x37f   :  { %4325 = vmatmul.mubr.msk.f32.gmra.mrb[86].mxu1 %vm111_vm0, %v5528_v0  ;;  %4375 = vmatmul.mubr.msk.f32.gmra.mrb[110].mxu0 %vm111_vm0, %v5528_v0 }
 0x380   :  { %4341 = vmatprep.mubr.msk.f32.mxu1 %vm111_vm0, %v5496_v5  ;;  %4391 = vmatprep.mubr.msk.f32.mxu0 %vm111_vm0, %v5496_v5 }
 0x383   :  { %4342 = vmatmul.mubr.msk.f32.vlgmr.msra.gmra.mrb[88].mxu1 %vm111_vm0, %v5512_v39  ;;  %4392 = vmatmul.mubr.msk.f32.vlgmr.msra.gmra.mrb[112].mxu0 %vm111_vm0, %v5512_v39 }
 0x384   :  { %4596 = vmatpush3.bf16.msra.mxu1 %v4593_v35  ;;  %4616 = vmatpush3.bf16.msra.mxu0 %v4613_v14  ;;  %v3496_v35 = vld [vmem:[%s5818_s2 + $0x58] sm:$0xff] }
 0x385   :  { %4602 = vmatprep.subr.bf16.mxu1 %v4601_v26  ;;  %4344 = vmatprep.mubr.msk.f32.mxu1 %vm111_vm0, %v5518_v8 }
 0x386   :  { %4394 = vmatprep.mubr.msk.f32.mxu0 %vm111_vm0, %v5518_v8 }
 0x387   :  { %4345 = vmatmul.mubr.msk.f32.gmra.mrb[90].mxu1 %vm111_vm0, %v5528_v0  ;;  %4395 = vmatmul.mubr.msk.f32.gmra.mrb[114].mxu0 %vm111_vm0, %v5528_v0 }
 0x388   :  { %4361 = vmatprep.mubr.msk.f32.mxu1 %vm111_vm0, %v5496_v5  ;;  %4411 = vmatprep.mubr.msk.f32.mxu0 %vm111_vm0, %v5496_v5 }
 0x38b   :  { %4362 = vmatmul.mubr.msk.f32.vlgmr.msra.gmra.mrb[92].mxu1 %vm111_vm0, %v5512_v39  ;;  %4412 = vmatmul.mubr.msk.f32.vlgmr.msra.gmra.mrb[116].mxu0 %vm111_vm0, %v5512_v39 }
 0x38c   :  { %4604 = vmatpush3.bf16.msra.mxu1 %v4601_v26  ;;  %4364 = vmatprep.mubr.msk.f32.mxu1 %vm111_vm0, %v5518_v8 }
 0x38d   :  { %4610 = vmatprep.subr.bf16.mxu1 %v4609_v16  ;;  %4414 = vmatprep.mubr.msk.f32.mxu0 %vm111_vm0, %v5518_v8 }
 0x38f   :  { %4365 = vmatmul.mubr.msk.f32.gmra.mrb[94].mxu1 %vm111_vm0, %v5528_v0  ;;  %4415 = vmatmul.mubr.msk.f32.gmra.mrb[118].mxu0 %vm111_vm0, %v5528_v0 }
 0x390   :  { %4381 = vmatprep.mubr.msk.f32.mxu1 %vm111_vm0, %v5496_v5 }
 0x393   :  { %4382 = vmatmul.mubr.msk.f32.vlgmr.msra.gmra.mrb[96].mxu1 %vm111_vm0, %v5512_v39 }
 0x394   :  { %4612 = vmatpush3.bf16.msra.mxu1 %v4609_v16  ;;  %4384 = vmatprep.mubr.msk.f32.mxu1 %vm111_vm0, %v5518_v8 }
 0x397   :  { %4385 = vmatmul.mubr.msk.f32.gmra.mrb[98].mxu1 %vm111_vm0, %v5528_v0 }
 0x398   :  { %4401 = vmatprep.mubr.msk.f32.mxu1 %vm111_vm0, %v5496_v5  ;;  %v1977_v5 = vld [vmem:[%s5818_s2] sm:$0xff] }
 0x39b   :  { %4402 = vmatmul.mubr.msk.f32.vlgmr.msra.gmra.mrb[100].mxu1 %vm111_vm0, %v5512_v39 }
 0x39c   :  { %4404 = vmatprep.mubr.msk.f32.mxu1 %vm111_vm0, %v5518_v8  ;;  %v1980_v8 = vld [vmem:[%s5818_s2 + $0x18] sm:$0xff] }
 0x39f   :  { %4405 = vmatmul.mubr.msk.f32.gmra.mrb[102].mxu1 %vm111_vm0, %v5528_v0  ;;  %v1979_v0 = vld [vmem:[%s5818_s2 + $0x10] sm:$0xff] }
 0x40e   :  { %v4263_v59 = vpop.f32.mrb[64].mxu1 }
 0x40f   :  { %v1870_v55 = vpop.f32.mrb[65].mxu1  ;;  %v1982_v18 = vmul.f32 %v4263_v59, %v1978_v57  ;;  %v3505_v57 = vld [vmem:[%s5818_s2 + $0x60] sm:$0xff] }
 0x410   :  { %v1981_v39 = vmul.f32 %v1977_v5, %v1870_v55 }
 0x412   :  { %v4266_v49 = vpop.f32.mrb[66].mxu1 }
 0x413   :  { %v1880_v43 = vpop.f32.mrb[67].mxu1  ;;  %v1984_v31 = vmul.f32 %v4266_v49, %v1980_v8  ;;  %v3506_v49 = vld [vmem:[%s5818_s2 + $0x68] sm:$0xff] }
 0x414   :  { %v1983_v37 = vmul.f32 %v1979_v0, %v1880_v43 }
 0x42e   :  { %v4273_v28 = vpop.f32.mrb[68].mxu1 }
 0x42f   :  { %v1986_v51 = vadd.f32 %v4273_v28, %v1982_v18  ;;  %v1958_v63 = vpop.f32.mrb[69].mxu1 }
 0x430   :  { %v1985_v23 = vadd.f32 %v1981_v39, %v1958_v63  ;;  %v3508_v63 = vld [vmem:[%s5818_s2 + $0x78] sm:$0xff] }
 0x431   :  { %1991 = vst.msk [vmem:[#allocation6 + $0x8] sm:$0xff] %vm1752_vm1, %v1986_v51 }
 0x432   :  { %1990 = vst.msk [vmem:[#allocation6] sm:$0xff] %vm1752_vm1, %v1985_v23  ;;  %v4276_v45 = vpop.f32.mrb[70].mxu1 }
 0x433   :  { %v1988_v61 = vadd.f32 %v4276_v45, %v1984_v31  ;;  %v1968_v12 = vpop.f32.mrb[71].mxu1  ;;  %v3507_v31 = vld [vmem:[%s5818_s2 + $0x70] sm:$0xff] }
 0x434   :  { %v1987_v53 = vadd.f32 %v1983_v37, %v1968_v12 }
 0x435   :  { %1993 = vst.msk [vmem:[#allocation6 + $0x18] sm:$0xff] %vm1752_vm1, %v1988_v61 }
 0x436   :  { %1992 = vst.msk [vmem:[#allocation6 + $0x10] sm:$0xff] %vm1752_vm1, %v1987_v53  ;;  %v4283_v47 = vpop.f32.mrb[72].mxu1  ;;  %v4313_v60 = vpop.f32.mrb[96].mxu0 }
 0x437   :  { %v2063_v38 = vpop.f32.mrb[73].mxu1  ;;  %v2345_v56 = vpop.f32.mrb[97].mxu0  ;;  %v2176_v44 = vmul.f32 %v4283_v47, %v3482_v62  ;;  %v3517_v62 = vld [vmem:[%s5818_s2 + $0x80] sm:$0xff] }
 0x438   :  { %v2175_v22 = vmul.f32 %v3481_v20, %v2063_v38  ;;  %v3518_v38 = vld [vmem:[%s5818_s2 + $0x88] sm:$0xff] }
 0x43a   :  { %v4286_v36 = vpop.f32.mrb[74].mxu1  ;;  %v4316_v41 = vpop.f32.mrb[98].mxu0 }
 0x43b   :  { %v2073_v3 = vpop.f32.mrb[75].mxu1  ;;  %v2355_v40 = vpop.f32.mrb[99].mxu0  ;;  %v2178_v10 = vmul.f32 %v4286_v36, %v3484_v30  ;;  %v3520_v30 = vld [vmem:[%s5818_s2 + $0x98] sm:$0xff] }
 0x43c   :  { %v2177_v19 = vmul.f32 %v3483_v52, %v2073_v3 }
 0x43e   :  { %v4293_v50 = vpop.f32.mrb[76].mxu1  ;;  %v4333_v46 = vpop.f32.mrb[100].mxu0 }
 0x43f   :  { %v2180_v42 = vadd.f32 %v4293_v50, %v2176_v44  ;;  %v2151_v1 = vpop.f32.mrb[77].mxu1  ;;  %v2539_v25 = vpop.f32.mrb[101].mxu0 }
 0x440   :  { %v2179_v4 = vadd.f32 %v2175_v22, %v2151_v1 }
 0x441   :  { %2185 = vst.msk [vmem:[#allocation6 + $0x28] sm:$0xff] %vm1752_vm1, %v2180_v42 }
 0x442   :  { %2184 = vst.msk [vmem:[#allocation6 + $0x20] sm:$0xff] %vm1752_vm1, %v2179_v4  ;;  %v4296_v24 = vpop.f32.mrb[78].mxu1  ;;  %v4336_v54 = vpop.f32.mrb[102].mxu0 }
 0x443   :  { %v2182_v6 = vadd.f32 %v4296_v24, %v2178_v10  ;;  %v2161_v7 = vpop.f32.mrb[79].mxu1  ;;  %v2549_v9 = vpop.f32.mrb[103].mxu0  ;;  %v3530_v24 = vld [vmem:[%s5818_s2 + $0xa8] sm:$0xff] }
 0x444   :  { %v2181_v11 = vadd.f32 %v2177_v19, %v2161_v7 }
 0x445   :  { %2187 = vst.msk [vmem:[#allocation6 + $0x38] sm:$0xff] %vm1752_vm1, %v2182_v6  ;;  %v3529_v6 = vld [vmem:[%s5818_s2 + $0xa0] sm:$0xff] }
 0x446   :  { %2186 = vst.msk [vmem:[#allocation6 + $0x30] sm:$0xff] %vm1752_vm1, %v2181_v11  ;;  %v4303_v33 = vpop.f32.mrb[80].mxu1  ;;  %v4353_v2 = vpop.f32.mrb[104].mxu0 }
 0x447   :  { %v2370_v29 = vmul.f32 %v4303_v33, %v3494_v13  ;;  %v2257_v34 = vpop.f32.mrb[81].mxu1  ;;  %v2733_v48 = vpop.f32.mrb[105].mxu0 }
 0x448   :  { %v2369_v27 = vmul.f32 %v3493_v15, %v2257_v34 }
 0x449   :  { %v2374_v14 = vadd.f32 %v4313_v60, %v2370_v29  ;;  %v3532_v29 = vld [vmem:[%s5818_s2 + $0xb8] sm:$0xff] }
 0x44a   :  { %v2373_v32 = vadd.f32 %v2369_v27, %v2345_v56  ;;  %v4306_v26 = vpop.f32.mrb[82].mxu1  ;;  %v4356_v58 = vpop.f32.mrb[106].mxu0 }
 0x44b   :  { %2379 = vst.msk [vmem:[#allocation6 + $0x48] sm:$0xff] %vm1752_vm1, %v2374_v14  ;;  %v2372_v21 = vmul.f32 %v4306_v26, %v3496_v35  ;;  %v2267_v16 = vpop.f32.mrb[83].mxu1  ;;  %v2743_v59 = vpop.f32.mrb[107].mxu0 }
 0x44c   :  { %2378 = vst.msk [vmem:[#allocation6 + $0x40] sm:$0xff] %vm1752_vm1, %v2373_v32  ;;  %v2371_v55 = vmul.f32 %v3495_v17, %v2267_v16 }
 0x44d   :  { %v2376_v43 = vadd.f32 %v4316_v41, %v2372_v21  ;;  %v3542_v21 = vld [vmem:[%s5818_s2 + $0xc8] sm:$0xff] }
 0x44e   :  { %v2375_v5 = vadd.f32 %v2371_v55, %v2355_v40  ;;  %v4323_v18 = vpop.f32.mrb[84].mxu1  ;;  %v4373_v39 = vpop.f32.mrb[108].mxu0 }
 0x44f   :  { %2381 = vst.msk [vmem:[#allocation6 + $0x58] sm:$0xff] %vm1752_vm1, %v2376_v43  ;;  %v2564_v8 = vmul.f32 %v4323_v18, %v3506_v49  ;;  %v2451_v28 = vpop.f32.mrb[85].mxu1  ;;  %v2927_v0 = vpop.f32.mrb[109].mxu0  ;;  %v3544_v18 = vld [vmem:[%s5818_s2 + $0xd8] sm:$0xff] }
 0x450   :  { %2380 = vst.msk [vmem:[#allocation6 + $0x50] sm:$0xff] %vm1752_vm1, %v2375_v5  ;;  %v2563_v51 = vmul.f32 %v3505_v57, %v2451_v28 }
 0x451   :  { %v2568_v23 = vadd.f32 %v4333_v46, %v2564_v8  ;;  %v3519_v46 = vld [vmem:[%s5818_s2 + $0x90] sm:$0xff] }
 0x452   :  { %v2567_v37 = vadd.f32 %v2563_v51, %v2539_v25  ;;  %v4326_v45 = vpop.f32.mrb[86].mxu1  ;;  %v4376_v61 = vpop.f32.mrb[110].mxu0  ;;  %v3543_v8 = vld [vmem:[%s5818_s2 + $0xd0] sm:$0xff] }
 0x453   :  { %2573 = vst.msk [vmem:[#allocation6 + $0x68] sm:$0xff] %vm1752_vm1, %v2568_v23  ;;  %v2566_v12 = vmul.f32 %v4326_v45, %v3508_v63  ;;  %v2461_v53 = vpop.f32.mrb[87].mxu1  ;;  %v2937_v47 = vpop.f32.mrb[111].mxu0  ;;  %v3553_v45 = vld [vmem:[%s5818_s2 + $0xe0] sm:$0xff] }
 0x454   :  { %2572 = vst.msk [vmem:[#allocation6 + $0x60] sm:$0xff] %vm1752_vm1, %v2567_v37  ;;  %v2565_v60 = vmul.f32 %v3507_v31, %v2461_v53  ;;  %v3554_v31 = vld [vmem:[%s5818_s2 + $0xe8] sm:$0xff] }
 0x455   :  { %v2570_v56 = vadd.f32 %v4336_v54, %v2566_v12 }
 0x456   :  { %v2569_v36 = vadd.f32 %v2565_v60, %v2549_v9  ;;  %v4343_v41 = vpop.f32.mrb[88].mxu1  ;;  %v4393_v20 = vpop.f32.mrb[112].mxu0 }
 0x457   :  { %2575 = vst.msk [vmem:[#allocation6 + $0x78] sm:$0xff] %vm1752_vm1, %v2570_v56  ;;  %v2758_v3 = vmul.f32 %v4343_v41, %v3518_v38  ;;  %v2645_v40 = vpop.f32.mrb[89].mxu1  ;;  %v3121_v44 = vpop.f32.mrb[113].mxu0  ;;  %v3556_v38 = vld [vmem:[%s5818_s2 + $0xf8] sm:$0xff] }
 0x458   :  { %2574 = vst.msk [vmem:[#allocation6 + $0x70] sm:$0xff] %vm1752_vm1, %v2569_v36  ;;  %v2757_v22 = vmul.f32 %v3517_v62, %v2645_v40  ;;  %v3555_v62 = vld [vmem:[%s5818_s2 + $0xf0] sm:$0xff] }
 0x459   :  { %v2762_v50 = vadd.f32 %v4353_v2, %v2758_v3 }
 0x45a   :  { %v2761_v52 = vadd.f32 %v2757_v22, %v2733_v48  ;;  %v4346_v42 = vpop.f32.mrb[90].mxu1  ;;  %v4396_v1 = vpop.f32.mrb[114].mxu0  ;;  %v3531_v48 = vld [vmem:[%s5818_s2 + $0xb0] sm:$0xff] }
 0x45b   :  { %2767 = vst.msk [vmem:[#allocation6 + $0x88] sm:$0xff] %vm1752_vm1, %v2762_v50  ;;  %v2760_v25 = vmul.f32 %v4346_v42, %v3520_v30  ;;  %v2655_v4 = vpop.f32.mrb[91].mxu1  ;;  %v3131_v10 = vpop.f32.mrb[115].mxu0 }
 0x45c   :  { %2766 = vst.msk [vmem:[#allocation6 + $0x80] sm:$0xff] %vm1752_vm1, %v2761_v52  ;;  %v2759_v19 = vmul.f32 %v3519_v46, %v2655_v4 }
 0x45d   :  { %v2764_v54 = vadd.f32 %v4356_v58, %v2760_v25 }
 0x45e   :  { %v2763_v7 = vadd.f32 %v2759_v19, %v2743_v59  ;;  %v4363_v9 = vpop.f32.mrb[92].mxu1  ;;  %v4413_v11 = vpop.f32.mrb[116].mxu0  ;;  %v3541_v59 = vld [vmem:[%s5818_s2 + $0xc0] sm:$0xff] }
 0x45f   :  { %2769 = vst.msk [vmem:[#allocation6 + $0x98] sm:$0xff] %vm1752_vm1, %v2764_v54  ;;  %v2952_v13 = vmul.f32 %v4363_v9, %v3530_v24  ;;  %v2839_v15 = vpop.f32.mrb[93].mxu1  ;;  %v3315_v33 = vpop.f32.mrb[117].mxu0 }
 0x460   :  { %2768 = vst.msk [vmem:[#allocation6 + $0x90] sm:$0xff] %vm1752_vm1, %v2763_v7  ;;  %v2951_v2 = vmul.f32 %v3529_v6, %v2839_v15 }
 0x461   :  { %v2956_v34 = vadd.f32 %v4373_v39, %v2952_v13 }
 0x462   :  { %v2955_v27 = vadd.f32 %v2951_v2, %v2927_v0  ;;  %v4366_v35 = vpop.f32.mrb[94].mxu1  ;;  %v4416_v14 = vpop.f32.mrb[118].mxu0 }
 0x463   :  { %2961 = vst.msk [vmem:[#allocation6 + $0xa8] sm:$0xff] %vm1752_vm1, %v2956_v34  ;;  %v2954_v17 = vmul.f32 %v4366_v35, %v3532_v29  ;;  %v2849_v32 = vpop.f32.mrb[95].mxu1  ;;  %v3325_v26 = vpop.f32.mrb[119].mxu0 }
 0x464   :  { %2960 = vst.msk [vmem:[#allocation6 + $0xa0] sm:$0xff] %vm1752_vm1, %v2955_v27  ;;  %v2953_v58 = vmul.f32 %v3531_v48, %v2849_v32 }
 0x465   :  { %v2958_v16 = vadd.f32 %v4376_v61, %v2954_v17 }
 0x466   :  { %v2957_v55 = vadd.f32 %v2953_v58, %v2937_v47  ;;  %v4383_v49 = vpop.f32.mrb[96].mxu1 }
 0x467   :  { %2963 = vst.msk [vmem:[#allocation6 + $0xb8] sm:$0xff] %vm1752_vm1, %v2958_v16  ;;  %v3146_v43 = vmul.f32 %v4383_v49, %v3542_v21  ;;  %v3033_v57 = vpop.f32.mrb[97].mxu1 }
 0x468   :  { %2962 = vst.msk [vmem:[#allocation6 + $0xb0] sm:$0xff] %vm1752_vm1, %v2957_v55  ;;  %v3145_v5 = vmul.f32 %v3541_v59, %v3033_v57 }
 0x469   :  { %v3150_v39 = vadd.f32 %v4393_v20, %v3146_v43 }
 0x46a   :  { %v3149_v28 = vadd.f32 %v3145_v5, %v3121_v44  ;;  %v4386_v0 = vpop.f32.mrb[98].mxu1 }
 0x46b   :  { %3155 = vst.msk [vmem:[#allocation6 + $0xc8] sm:$0xff] %vm1752_vm1, %v3150_v39  ;;  %v3148_v51 = vmul.f32 %v4386_v0, %v3544_v18  ;;  %v3043_v63 = vpop.f32.mrb[99].mxu1 }
 0x46c   :  { %3154 = vst.msk [vmem:[#allocation6 + $0xc0] sm:$0xff] %vm1752_vm1, %v3149_v28  ;;  %v3147_v23 = vmul.f32 %v3543_v8, %v3043_v63 }
 0x46d   :  { %v3152_v37 = vadd.f32 %v4396_v1, %v3148_v51 }
 0x46e   :  { %v3151_v61 = vadd.f32 %v3147_v23, %v3131_v10  ;;  %v4403_v12 = vpop.f32.mrb[100].mxu1 }
 0x46f   :  { %3157 = vst.msk [vmem:[#allocation6 + $0xd8] sm:$0xff] %vm1752_vm1, %v3152_v37  ;;  %v3340_v53 = vmul.f32 %v4403_v12, %v3554_v31  ;;  %v3227_v47 = vpop.f32.mrb[101].mxu1 }
 0x470   :  { %3156 = vst.msk [vmem:[#allocation6 + $0xd0] sm:$0xff] %vm1752_vm1, %v3151_v61  ;;  %v3339_v60 = vmul.f32 %v3553_v45, %v3227_v47 }
 0x471   :  { %v3344_v56 = vadd.f32 %v4413_v11, %v3340_v53 }
 0x472   :  { %v3343_v36 = vadd.f32 %v3339_v60, %v3315_v33  ;;  %v4406_v41 = vpop.f32.mrb[102].mxu1 }
 0x473   :  { %3349 = vst.msk [vmem:[#allocation6 + $0xe8] sm:$0xff] %vm1752_vm1, %v3344_v56  ;;  %v3342_v20 = vmul.f32 %v4406_v41, %v3556_v38  ;;  %v3237_v3 = vpop.f32.mrb[103].mxu1 }
 0x474   :  { %3348 = vst.msk [vmem:[#allocation6 + $0xe0] sm:$0xff] %vm1752_vm1, %v3343_v36  ;;  %v3341_v40 = vmul.f32 %v3555_v62, %v3237_v3 }
 0x475   :  { %v3346_v44 = vadd.f32 %v4416_v14, %v3342_v20 }
 0x476   :  { %v3345_v22 = vadd.f32 %v3341_v40, %v3325_v26 }
 0x477   :  { %3351 = vst.msk [vmem:[#allocation6 + $0xf8] sm:$0xff] %vm1752_vm1, %v3346_v44 }
 0x478   :  { %3350 = vst.msk [vmem:[#allocation6 + $0xf0] sm:$0xff] %vm1752_vm1, %v3345_v22 }
 0x479   :  { %4686 = shalt.err (!%p4683_p12)
}
 0x47a   :  { %s4687_s9 = scalar_lea.hbm %s5823_s7, 4096 }
 0x47b   :  { %p4688_p13 = scmp.ne.s32.totalorder %s5823_s7, %s4687_s9  ;;  %p4691_p0 = scmp.lt.u32.totalorder %s4687_s9, %s5823_s7 }
 0x47d   :  { %p4693_p1 = pnand %p4691_p0, %p4688_p13 }
 0x47f   :  { %4696 = shalt.err (!%p4693_p1)
}
 0x480   :  { %3363 = dma.vmem_to_hbm [thread:$0]  %s3358_s30, 4096, %s5823_s7, [#allocation5], %s4702_s11, %s4702_s11, %s4703_s12  }
 0x481   :  { %4699 = dma.done.wait [#allocation5], 4096  }
 0x482   :  { %4700 = vsyncadd [#allocation5], 4294963200 }
 0x483   :  { %3367 = vsyncpa [#allocation4], 1 }
 0x484   :  { %3368 = vsyncpa [#allocation5], 1 }

</bundles_post_ra>
